<compile_context>
chip_gen: v6e
topology: v6e:2x2x1
jax: 0.10.0
libtpu: 0.0.40
codegen_flags: <defaults>
</compile_context>

<pallas_src>
import functools

import jax
import jax.numpy as jnp
from jax.experimental import pallas as pl
from jax.experimental.pallas import tpu as pltpu

EPS = 1e-5


def _resblock_kernel(x_ref, w1_ref, w2_ref, g1_ref, b1_ref, g2_ref, b2_ref,
                     mask_ref, o_ref, hbuf_ref, *, S, Pp, Wp, inv_count):
    Cp = o_ref.shape[0]
    mask = mask_ref[...]                      # [1, Pp] interior mask (f32)

    # Zero only the two halo strips of the scratch; its interior is fully
    # overwritten below (the input's halo strips were zeroed by the wrapper).
    zeros_strip = jnp.zeros((Cp, S), jnp.float32)
    hbuf_ref[:, pl.ds(0, S)] = zeros_strip
    hbuf_ref[:, pl.ds(S + Pp, S)] = zeros_strip

    def conv3x3(w_ref, src_ref):
        # 9 shifted-slice matmuls; taps read genuine zeros at image borders
        # because the flat layout is padded per row (stride Wp = W+2) and per
        # image (Hp = H+2).  Center tap (s=0) is a lane-aligned load.
        acc = None
        for kh in range(3):
            for kw in range(3):
                t = kh * 3 + kw
                s = (kh - 1) * Wp + (kw - 1)
                shifted = src_ref[:, pl.ds(S + s, Pp)]
                part = jnp.dot(w_ref[t], shifted,
                               preferred_element_type=jnp.float32)
                acc = part if acc is None else acc + part
        return acc

    def batchnorm(ym, g_ref, b_ref):
        # Training-mode BN; ym is zero at masked (border/tail) positions so
        # the one-pass sums see only the N*H*W valid pixels.
        s1 = jnp.sum(ym, axis=1, keepdims=True)
        s2 = jnp.sum(ym * ym, axis=1, keepdims=True)
        mean = s1 * inv_count
        var = jnp.maximum(s2 * inv_count - mean * mean, 0.0)
        scale = g_ref[...] * jax.lax.rsqrt(var + EPS)
        shift = b_ref[...] - mean * scale
        return ym * scale + shift

    # conv1 (padding=1, no bias) -> BN1 -> ReLU; taps read x_ref directly.
    y1 = conv3x3(w1_ref, x_ref) * mask
    h1 = jnp.maximum(batchnorm(y1, g1_ref, b1_ref), 0.0) * mask
    hbuf_ref[:, pl.ds(S, Pp)] = h1

    # conv2 (padding=1, no bias) -> BN2
    y2 = conv3x3(w2_ref, hbuf_ref) * mask
    h2 = batchnorm(y2, g2_ref, b2_ref)

    # residual add + ReLU (the module's `self.leaky` is nn.ReLU)
    x_c = x_ref[:, pl.ds(S, Pp)]
    o_ref[...] = jnp.maximum(x_c + h2, 0.0).astype(o_ref.dtype)


def residual_block(x_nchw, w1_oihw, w2_oihw, g1, b1, g2, b2):
    """PyTorch-convention wrapper: x in NCHW, conv weights in OIHW."""
    N, C, H, W = x_nchw.shape
    Cp = max(8, -(-C // 8) * 8)                 # fill all 8 f32 sublanes
    Hp, Wp = H + 2, W + 2                       # per-image spatial padding of 1
    pp_raw = N * Hp * Wp
    Pp = -(-pp_raw // 128) * 128                # lane-dense pixel axis
    S = max(128, -(-(Wp + 1) // 128) * 128)     # lane-aligned halo offset
    inv_count = 1.0 / float(N * H * W)          # BN stats over valid pixels

    # Activations: channels on sublanes, padded pixels on lanes, with an
    # S-wide zero halo on both ends so conv taps are plain shifted slices.
    xp = jnp.pad(x_nchw, ((0, 0), (0, Cp - C), (1, 1), (1, 1)))
    xp = jnp.transpose(xp, (1, 0, 2, 3)).reshape(Cp, pp_raw)
    xp = jnp.pad(xp, ((0, 0), (S, S + Pp - pp_raw)))

    def prep_w(w):   # (O, I, 3, 3) -> (9, Cp, Cp), tap-major, zero-padded
        wt = jnp.transpose(w, (2, 3, 0, 1)).reshape(9, C, C)
        return jnp.pad(wt, ((0, 0), (0, Cp - C), (0, Cp - C)))

    def prep_p(v):   # per-channel BN affine param -> (Cp, 1), zero-padded
        return jnp.pad(v.reshape(C, 1), ((0, Cp - C), (0, 0)))

    # Interior mask: 1 for real image pixels, 0 for padding / tail lanes.
    p = jnp.arange(Pp, dtype=jnp.int32)
    q = p % (Hp * Wp)
    hh = q // Wp
    ww = q % Wp
    mask = ((p < pp_raw) & (hh >= 1) & (hh <= H) & (ww >= 1) & (ww <= W))
    mask = mask.astype(jnp.float32).reshape(1, Pp)

    vmem = pl.BlockSpec(memory_space=pltpu.MemorySpace.VMEM)
    kernel = functools.partial(_resblock_kernel, S=S, Pp=Pp, Wp=Wp,
                               inv_count=inv_count)
    out_cp = pl.pallas_call(
        kernel,
        out_shape=jax.ShapeDtypeStruct((Cp, Pp), jnp.float32),
        in_specs=[vmem] * 8,
        out_specs=vmem,
        scratch_shapes=[
            pltpu.VMEM((Cp, Pp + 2 * S), jnp.float32),   # halo-padded h1 slab
        ],
    )(xp, prep_w(w1_oihw), prep_w(w2_oihw),
      prep_p(g1), prep_p(b1), prep_p(g2), prep_p(b2), mask)

    out = out_cp[:C, :pp_raw].reshape(C, N, Hp, Wp)[:, :, 1:H + 1, 1:W + 1]
    return jnp.transpose(out, (1, 0, 2, 3))


def _reference_nchw(x, w1, w2, g1, b1, g2, b2):
    """Pure-JAX NCHW reference mirroring the PyTorch module exactly."""
    def conv(y, w):
        return jax.lax.conv_general_dilated(
            y, w, (1, 1), ((1, 1), (1, 1)),
            dimension_numbers=("NCHW", "OIHW", "NCHW"))

    def bn(y, g, b):
        mean = jnp.mean(y, axis=(0, 2, 3), keepdims=True)
        var = jnp.mean((y - mean) ** 2, axis=(0, 2, 3), keepdims=True)
        return ((y - mean) * jax.lax.rsqrt(var + EPS)
                * g.reshape(1, -1, 1, 1) + b.reshape(1, -1, 1, 1))

    h = jax.nn.relu(bn(conv(x, w1), g1, b1))
    h = bn(conv(h, w2), g2, b2)
    return jax.nn.relu(x + h)


if __name__ == "__main__":
    N, C, H, W = 2, 4, 16, 16
    key = jax.random.PRNGKey(0)
    kx, kw1, kw2, kg1, kb1, kg2, kb2 = jax.random.split(key, 7)

    x = jax.random.normal(kx, (N, C, H, W), jnp.float32)
    # Conv2d(C, C, 3, bias=False) weights, OIHW, deterministic init.
    fan_in_scale = 1.0 / (3.0 * 3.0 * C) ** 0.5
    w1 = jax.random.normal(kw1, (C, C, 3, 3), jnp.float32) * fan_in_scale
    w2 = jax.random.normal(kw2, (C, C, 3, 3), jnp.float32) * fan_in_scale
    # BatchNorm affine params (PyTorch inits to 1/0; perturb deterministically).
    g1 = 1.0 + 0.1 * jax.random.normal(kg1, (C,), jnp.float32)
    b1 = 0.1 * jax.random.normal(kb1, (C,), jnp.float32)
    g2 = 1.0 + 0.1 * jax.random.normal(kg2, (C,), jnp.float32)
    b2 = 0.1 * jax.random.normal(kb2, (C,), jnp.float32)

    out = residual_block(x, w1, w2, g1, b1, g2, b2)
    out = jax.block_until_ready(out)

    ref = _reference_nchw(x, w1, w2, g1, b1, g2, b2)
    assert out.shape == (N, C, H, W)
    err = float(jnp.max(jnp.abs(out - ref)))
    assert jnp.allclose(out, ref, atol=2e-3, rtol=2e-3), err

    print("KERNEL_OK")
</pallas_src>

<mosaic_0001>
module attributes {stable_mosaic.version = 11 : i64} {
  func.func @_resblock_kernel(%arg0: memref<8x1024xf32, #tpu.memory_space<vmem>>, %arg1: memref<9x8x8xf32, #tpu.memory_space<vmem>>, %arg2: memref<9x8x8xf32, #tpu.memory_space<vmem>>, %arg3: memref<8x1xf32, #tpu.memory_space<vmem>>, %arg4: memref<8x1xf32, #tpu.memory_space<vmem>>, %arg5: memref<8x1xf32, #tpu.memory_space<vmem>>, %arg6: memref<8x1xf32, #tpu.memory_space<vmem>>, %arg7: memref<1x768xf32, #tpu.memory_space<vmem>>, %arg8: memref<8x768xf32, #tpu.memory_space<vmem>>, %arg9: memref<8x1024xf32, #tpu.memory_space<vmem>>) attributes {dimension_semantics = [], scalar_prefetch = 0 : i64, scratch_operands = 1 : i64, tpu.core_type = #tpu.core_type<tc>} {
    %c0 = arith.constant 0 : index
    %c0_0 = arith.constant 0 : index
    %0 = vector.load %arg7[%c0, %c0_0] : memref<1x768xf32, #tpu.memory_space<vmem>>, vector<1x768xf32>
    %cst = arith.constant 0.000000e+00 : f32
    %1 = vector.broadcast %cst : f32 to vector<8x128xf32>
    %c0_1 = arith.constant 0 : index
    %c0_2 = arith.constant 0 : index
    %2 = vector.load %arg9[%c0_1, %c0_2] : memref<8x1024xf32, #tpu.memory_space<vmem>>, vector<8x128xf32>
    tpu.vector_store %arg9[%c0_1, %c0_2], %1 {strides = array<i32>} : memref<8x1024xf32, #tpu.memory_space<vmem>>, vector<8x128xf32>,
    %c0_3 = arith.constant 0 : index
    %c896 = arith.constant 896 : index
    %3 = vector.load %arg9[%c0_3, %c896] : memref<8x1024xf32, #tpu.memory_space<vmem>>, vector<8x128xf32>
    tpu.vector_store %arg9[%c0_3, %c896], %1 {strides = array<i32>} : memref<8x1024xf32, #tpu.memory_space<vmem>>, vector<8x128xf32>,
    %c0_4 = arith.constant 0 : index
    %c109 = arith.constant 109 : index
    %4 = vector.load %arg0[%c0_4, %c109] : memref<8x1024xf32, #tpu.memory_space<vmem>>, vector<8x768xf32>
    %c0_5 = arith.constant 0 : index
    %c0_6 = arith.constant 0 : index
    %c0_7 = arith.constant 0 : index
    %5 = vector.load %arg1[%c0_5, %c0_6, %c0_7] : memref<9x8x8xf32, #tpu.memory_space<vmem>>, vector<1x8x8xf32>
    %6 = vector.shape_cast %5 : vector<1x8x8xf32> to vector<8x8xf32>
    %cst_8 = arith.constant dense<0.000000e+00> : vector<8x768xf32>
    %7 = tpu.matmul %6, %4, %cst_8 {dimension_numbers = #tpu.dot_dimension_numbers<[1], [0], [0], [1], [0, 0, 1, 1], [], []>} : vector<8x8xf32>, vector<8x768xf32>, vector<8x768xf32> -> vector<8x768xf32>
    %c0_9 = arith.constant 0 : index
    %c110 = arith.constant 110 : index
    %8 = vector.load %arg0[%c0_9, %c110] : memref<8x1024xf32, #tpu.memory_space<vmem>>, vector<8x768xf32>
    %c1 = arith.constant 1 : index
    %c0_10 = arith.constant 0 : index
    %c0_11 = arith.constant 0 : index
    %9 = vector.load %arg1[%c1, %c0_10, %c0_11] : memref<9x8x8xf32, #tpu.memory_space<vmem>>, vector<1x8x8xf32>
    %10 = vector.shape_cast %9 : vector<1x8x8xf32> to vector<8x8xf32>
    %cst_12 = arith.constant dense<0.000000e+00> : vector<8x768xf32>
    %11 = tpu.matmul %10, %8, %cst_12 {dimension_numbers = #tpu.dot_dimension_numbers<[1], [0], [0], [1], [0, 0, 1, 1], [], []>} : vector<8x8xf32>, vector<8x768xf32>, vector<8x768xf32> -> vector<8x768xf32>
    %12 = arith.addf %7, %11 : vector<8x768xf32>
    %c0_13 = arith.constant 0 : index
    %c111 = arith.constant 111 : index
    %13 = vector.load %arg0[%c0_13, %c111] : memref<8x1024xf32, #tpu.memory_space<vmem>>, vector<8x768xf32>
    %c2 = arith.constant 2 : index
    %c0_14 = arith.constant 0 : index
    %c0_15 = arith.constant 0 : index
    %14 = vector.load %arg1[%c2, %c0_14, %c0_15] : memref<9x8x8xf32, #tpu.memory_space<vmem>>, vector<1x8x8xf32>
    %15 = vector.shape_cast %14 : vector<1x8x8xf32> to vector<8x8xf32>
    %cst_16 = arith.constant dense<0.000000e+00> : vector<8x768xf32>
    %16 = tpu.matmul %15, %13, %cst_16 {dimension_numbers = #tpu.dot_dimension_numbers<[1], [0], [0], [1], [0, 0, 1, 1], [], []>} : vector<8x8xf32>, vector<8x768xf32>, vector<8x768xf32> -> vector<8x768xf32>
    %17 = arith.addf %12, %16 : vector<8x768xf32>
    %c0_17 = arith.constant 0 : index
    %c127 = arith.constant 127 : index
    %18 = vector.load %arg0[%c0_17, %c127] : memref<8x1024xf32, #tpu.memory_space<vmem>>, vector<8x768xf32>
    %c3 = arith.constant 3 : index
    %c0_18 = arith.constant 0 : index
    %c0_19 = arith.constant 0 : index
    %19 = vector.load %arg1[%c3, %c0_18, %c0_19] : memref<9x8x8xf32, #tpu.memory_space<vmem>>, vector<1x8x8xf32>
    %20 = vector.shape_cast %19 : vector<1x8x8xf32> to vector<8x8xf32>
    %cst_20 = arith.constant dense<0.000000e+00> : vector<8x768xf32>
    %21 = tpu.matmul %20, %18, %cst_20 {dimension_numbers = #tpu.dot_dimension_numbers<[1], [0], [0], [1], [0, 0, 1, 1], [], []>} : vector<8x8xf32>, vector<8x768xf32>, vector<8x768xf32> -> vector<8x768xf32>
    %22 = arith.addf %17, %21 : vector<8x768xf32>
    %c0_21 = arith.constant 0 : index
    %c128 = arith.constant 128 : index
    %23 = vector.load %arg0[%c0_21, %c128] : memref<8x1024xf32, #tpu.memory_space<vmem>>, vector<8x768xf32>
    %c4 = arith.constant 4 : index
    %c0_22 = arith.constant 0 : index
    %c0_23 = arith.constant 0 : index
    %24 = vector.load %arg1[%c4, %c0_22, %c0_23] : memref<9x8x8xf32, #tpu.memory_space<vmem>>, vector<1x8x8xf32>
    %25 = vector.shape_cast %24 : vector<1x8x8xf32> to vector<8x8xf32>
    %cst_24 = arith.constant dense<0.000000e+00> : vector<8x768xf32>
    %26 = tpu.matmul %25, %23, %cst_24 {dimension_numbers = #tpu.dot_dimension_numbers<[1], [0], [0], [1], [0, 0, 1, 1], [], []>} : vector<8x8xf32>, vector<8x768xf32>, vector<8x768xf32> -> vector<8x768xf32>
    %27 = arith.addf %22, %26 : vector<8x768xf32>
    %c0_25 = arith.constant 0 : index
    %c129 = arith.constant 129 : index
    %28 = vector.load %arg0[%c0_25, %c129] : memref<8x1024xf32, #tpu.memory_space<vmem>>, vector<8x768xf32>
    %c5 = arith.constant 5 : index
    %c0_26 = arith.constant 0 : index
    %c0_27 = arith.constant 0 : index
    %29 = vector.load %arg1[%c5, %c0_26, %c0_27] : memref<9x8x8xf32, #tpu.memory_space<vmem>>, vector<1x8x8xf32>
    %30 = vector.shape_cast %29 : vector<1x8x8xf32> to vector<8x8xf32>
    %cst_28 = arith.constant dense<0.000000e+00> : vector<8x768xf32>
    %31 = tpu.matmul %30, %28, %cst_28 {dimension_numbers = #tpu.dot_dimension_numbers<[1], [0], [0], [1], [0, 0, 1, 1], [], []>} : vector<8x8xf32>, vector<8x768xf32>, vector<8x768xf32> -> vector<8x768xf32>
    %32 = arith.addf %27, %31 : vector<8x768xf32>
    %c0_29 = arith.constant 0 : index
    %c145 = arith.constant 145 : index
    %33 = vector.load %arg0[%c0_29, %c145] : memref<8x1024xf32, #tpu.memory_space<vmem>>, vector<8x768xf32>
    %c6 = arith.constant 6 : index
    %c0_30 = arith.constant 0 : index
    %c0_31 = arith.constant 0 : index
    %34 = vector.load %arg1[%c6, %c0_30, %c0_31] : memref<9x8x8xf32, #tpu.memory_space<vmem>>, vector<1x8x8xf32>
    %35 = vector.shape_cast %34 : vector<1x8x8xf32> to vector<8x8xf32>
    %cst_32 = arith.constant dense<0.000000e+00> : vector<8x768xf32>
    %36 = tpu.matmul %35, %33, %cst_32 {dimension_numbers = #tpu.dot_dimension_numbers<[1], [0], [0], [1], [0, 0, 1, 1], [], []>} : vector<8x8xf32>, vector<8x768xf32>, vector<8x768xf32> -> vector<8x768xf32>
    %37 = arith.addf %32, %36 : vector<8x768xf32>
    %c0_33 = arith.constant 0 : index
    %c146 = arith.constant 146 : index
    %38 = vector.load %arg0[%c0_33, %c146] : memref<8x1024xf32, #tpu.memory_space<vmem>>, vector<8x768xf32>
    %c7 = arith.constant 7 : index
    %c0_34 = arith.constant 0 : index
    %c0_35 = arith.constant 0 : index
    %39 = vector.load %arg1[%c7, %c0_34, %c0_35] : memref<9x8x8xf32, #tpu.memory_space<vmem>>, vector<1x8x8xf32>
    %40 = vector.shape_cast %39 : vector<1x8x8xf32> to vector<8x8xf32>
    %cst_36 = arith.constant dense<0.000000e+00> : vector<8x768xf32>
    %41 = tpu.matmul %40, %38, %cst_36 {dimension_numbers = #tpu.dot_dimension_numbers<[1], [0], [0], [1], [0, 0, 1, 1], [], []>} : vector<8x8xf32>, vector<8x768xf32>, vector<8x768xf32> -> vector<8x768xf32>
    %42 = arith.addf %37, %41 : vector<8x768xf32>
    %c0_37 = arith.constant 0 : index
    %c147 = arith.constant 147 : index
    %43 = vector.load %arg0[%c0_37, %c147] : memref<8x1024xf32, #tpu.memory_space<vmem>>, vector<8x768xf32>
    %c8 = arith.constant 8 : index
    %c0_38 = arith.constant 0 : index
    %c0_39 = arith.constant 0 : index
    %44 = vector.load %arg1[%c8, %c0_38, %c0_39] : memref<9x8x8xf32, #tpu.memory_space<vmem>>, vector<1x8x8xf32>
    %45 = vector.shape_cast %44 : vector<1x8x8xf32> to vector<8x8xf32>
    %cst_40 = arith.constant dense<0.000000e+00> : vector<8x768xf32>
    %46 = tpu.matmul %45, %43, %cst_40 {dimension_numbers = #tpu.dot_dimension_numbers<[1], [0], [0], [1], [0, 0, 1, 1], [], []>} : vector<8x8xf32>, vector<8x768xf32>, vector<8x768xf32> -> vector<8x768xf32>
    %47 = arith.addf %42, %46 : vector<8x768xf32>
    %48 = vector.broadcast %0 : vector<1x768xf32> to vector<8x768xf32>
    %49 = arith.mulf %47, %48 : vector<8x768xf32>
    %cst_41 = arith.constant dense<0.000000e+00> : vector<8xf32>
    %50 = vector.multi_reduction <add>, %49, %cst_41 [1] : vector<8x768xf32> to vector<8xf32>
    %51 = vector.shape_cast %50 : vector<8xf32> to vector<8x1xf32>
    %52 = arith.mulf %49, %49 : vector<8x768xf32>
    %cst_42 = arith.constant dense<0.000000e+00> : vector<8xf32>
    %53 = vector.multi_reduction <add>, %52, %cst_42 [1] : vector<8x768xf32> to vector<8xf32>
    %54 = vector.shape_cast %53 : vector<8xf32> to vector<8x1xf32>
    %cst_43 = arith.constant 0.001953125 : f32
    %55 = vector.broadcast %cst_43 : f32 to vector<8x1xf32>
    %56 = arith.mulf %51, %55 : vector<8x1xf32>
    %cst_44 = arith.constant 0.001953125 : f32
    %57 = vector.broadcast %cst_44 : f32 to vector<8x1xf32>
    %58 = arith.mulf %54, %57 : vector<8x1xf32>
    %59 = arith.mulf %56, %56 : vector<8x1xf32>
    %60 = arith.subf %58, %59 : vector<8x1xf32>
    %cst_45 = arith.constant 0.000000e+00 : f32
    %61 = vector.broadcast %cst_45 : f32 to vector<8x1xf32>
    %62 = arith.maximumf %60, %61 : vector<8x1xf32>
    %c0_46 = arith.constant 0 : index
    %c0_47 = arith.constant 0 : index
    %63 = vector.load %arg3[%c0_46, %c0_47] : memref<8x1xf32, #tpu.memory_space<vmem>>, vector<8x1xf32>
    %cst_48 = arith.constant 9.99999974E-6 : f32
    %64 = vector.broadcast %cst_48 : f32 to vector<8x1xf32>
    %65 = arith.addf %62, %64 : vector<8x1xf32>
    %66 = math.rsqrt %65 : vector<8x1xf32>
    %67 = arith.mulf %63, %66 : vector<8x1xf32>
    %c0_49 = arith.constant 0 : index
    %c0_50 = arith.constant 0 : index
    %68 = vector.load %arg4[%c0_49, %c0_50] : memref<8x1xf32, #tpu.memory_space<vmem>>, vector<8x1xf32>
    %69 = arith.mulf %56, %67 : vector<8x1xf32>
    %70 = arith.subf %68, %69 : vector<8x1xf32>
    %71 = vector.broadcast %67 : vector<8x1xf32> to vector<8x768xf32>
    %72 = arith.mulf %49, %71 : vector<8x768xf32>
    %73 = vector.broadcast %70 : vector<8x1xf32> to vector<8x768xf32>
    %74 = arith.addf %72, %73 : vector<8x768xf32>
    %cst_51 = arith.constant 0.000000e+00 : f32
    %75 = vector.broadcast %cst_51 : f32 to vector<8x768xf32>
    %76 = arith.maximumf %74, %75 : vector<8x768xf32>
    %77 = vector.broadcast %0 : vector<1x768xf32> to vector<8x768xf32>
    %78 = arith.mulf %76, %77 : vector<8x768xf32>
    %c0_52 = arith.constant 0 : index
    %c128_53 = arith.constant 128 : index
    %79 = vector.load %arg9[%c0_52, %c128_53] : memref<8x1024xf32, #tpu.memory_space<vmem>>, vector<8x768xf32>
    tpu.vector_store %arg9[%c0_52, %c128_53], %78 {strides = array<i32>} : memref<8x1024xf32, #tpu.memory_space<vmem>>, vector<8x768xf32>,
    %c0_54 = arith.constant 0 : index
    %c109_55 = arith.constant 109 : index
    %80 = vector.load %arg9[%c0_54, %c109_55] : memref<8x1024xf32, #tpu.memory_space<vmem>>, vector<8x768xf32>
    %c0_56 = arith.constant 0 : index
    %c0_57 = arith.constant 0 : index
    %c0_58 = arith.constant 0 : index
    %81 = vector.load %arg2[%c0_56, %c0_57, %c0_58] : memref<9x8x8xf32, #tpu.memory_space<vmem>>, vector<1x8x8xf32>
    %82 = vector.shape_cast %81 : vector<1x8x8xf32> to vector<8x8xf32>
    %cst_59 = arith.constant dense<0.000000e+00> : vector<8x768xf32>
    %83 = tpu.matmul %82, %80, %cst_59 {dimension_numbers = #tpu.dot_dimension_numbers<[1], [0], [0], [1], [0, 0, 1, 1], [], []>} : vector<8x8xf32>, vector<8x768xf32>, vector<8x768xf32> -> vector<8x768xf32>
    %c0_60 = arith.constant 0 : index
    %c110_61 = arith.constant 110 : index
    %84 = vector.load %arg9[%c0_60, %c110_61] : memref<8x1024xf32, #tpu.memory_space<vmem>>, vector<8x768xf32>
    %c1_62 = arith.constant 1 : index
    %c0_63 = arith.constant 0 : index
    %c0_64 = arith.constant 0 : index
    %85 = vector.load %arg2[%c1_62, %c0_63, %c0_64] : memref<9x8x8xf32, #tpu.memory_space<vmem>>, vector<1x8x8xf32>
    %86 = vector.shape_cast %85 : vector<1x8x8xf32> to vector<8x8xf32>
    %cst_65 = arith.constant dense<0.000000e+00> : vector<8x768xf32>
    %87 = tpu.matmul %86, %84, %cst_65 {dimension_numbers = #tpu.dot_dimension_numbers<[1], [0], [0], [1], [0, 0, 1, 1], [], []>} : vector<8x8xf32>, vector<8x768xf32>, vector<8x768xf32> -> vector<8x768xf32>
    %88 = arith.addf %83, %87 : vector<8x768xf32>
    %c0_66 = arith.constant 0 : index
    %c111_67 = arith.constant 111 : index
    %89 = vector.load %arg9[%c0_66, %c111_67] : memref<8x1024xf32, #tpu.memory_space<vmem>>, vector<8x768xf32>
    %c2_68 = arith.constant 2 : index
    %c0_69 = arith.constant 0 : index
    %c0_70 = arith.constant 0 : index
    %90 = vector.load %arg2[%c2_68, %c0_69, %c0_70] : memref<9x8x8xf32, #tpu.memory_space<vmem>>, vector<1x8x8xf32>
    %91 = vector.shape_cast %90 : vector<1x8x8xf32> to vector<8x8xf32>
    %cst_71 = arith.constant dense<0.000000e+00> : vector<8x768xf32>
    %92 = tpu.matmul %91, %89, %cst_71 {dimension_numbers = #tpu.dot_dimension_numbers<[1], [0], [0], [1], [0, 0, 1, 1], [], []>} : vector<8x8xf32>, vector<8x768xf32>, vector<8x768xf32> -> vector<8x768xf32>
    %93 = arith.addf %88, %92 : vector<8x768xf32>
    %c0_72 = arith.constant 0 : index
    %c127_73 = arith.constant 127 : index
    %94 = vector.load %arg9[%c0_72, %c127_73] : memref<8x1024xf32, #tpu.memory_space<vmem>>, vector<8x768xf32>
    %c3_74 = arith.constant 3 : index
    %c0_75 = arith.constant 0 : index
    %c0_76 = arith.constant 0 : index
    %95 = vector.load %arg2[%c3_74, %c0_75, %c0_76] : memref<9x8x8xf32, #tpu.memory_space<vmem>>, vector<1x8x8xf32>
    %96 = vector.shape_cast %95 : vector<1x8x8xf32> to vector<8x8xf32>
    %cst_77 = arith.constant dense<0.000000e+00> : vector<8x768xf32>
    %97 = tpu.matmul %96, %94, %cst_77 {dimension_numbers = #tpu.dot_dimension_numbers<[1], [0], [0], [1], [0, 0, 1, 1], [], []>} : vector<8x8xf32>, vector<8x768xf32>, vector<8x768xf32> -> vector<8x768xf32>
    %98 = arith.addf %93, %97 : vector<8x768xf32>
    %c0_78 = arith.constant 0 : index
    %c128_79 = arith.constant 128 : index
    %99 = vector.load %arg9[%c0_78, %c128_79] : memref<8x1024xf32, #tpu.memory_space<vmem>>, vector<8x768xf32>
    %c4_80 = arith.constant 4 : index
    %c0_81 = arith.constant 0 : index
    %c0_82 = arith.constant 0 : index
    %100 = vector.load %arg2[%c4_80, %c0_81, %c0_82] : memref<9x8x8xf32, #tpu.memory_space<vmem>>, vector<1x8x8xf32>
    %101 = vector.shape_cast %100 : vector<1x8x8xf32> to vector<8x8xf32>
    %cst_83 = arith.constant dense<0.000000e+00> : vector<8x768xf32>
    %102 = tpu.matmul %101, %99, %cst_83 {dimension_numbers = #tpu.dot_dimension_numbers<[1], [0], [0], [1], [0, 0, 1, 1], [], []>} : vector<8x8xf32>, vector<8x768xf32>, vector<8x768xf32> -> vector<8x768xf32>
    %103 = arith.addf %98, %102 : vector<8x768xf32>
    %c0_84 = arith.constant 0 : index
    %c129_85 = arith.constant 129 : index
    %104 = vector.load %arg9[%c0_84, %c129_85] : memref<8x1024xf32, #tpu.memory_space<vmem>>, vector<8x768xf32>
    %c5_86 = arith.constant 5 : index
    %c0_87 = arith.constant 0 : index
    %c0_88 = arith.constant 0 : index
    %105 = vector.load %arg2[%c5_86, %c0_87, %c0_88] : memref<9x8x8xf32, #tpu.memory_space<vmem>>, vector<1x8x8xf32>
    %106 = vector.shape_cast %105 : vector<1x8x8xf32> to vector<8x8xf32>
    %cst_89 = arith.constant dense<0.000000e+00> : vector<8x768xf32>
    %107 = tpu.matmul %106, %104, %cst_89 {dimension_numbers = #tpu.dot_dimension_numbers<[1], [0], [0], [1], [0, 0, 1, 1], [], []>} : vector<8x8xf32>, vector<8x768xf32>, vector<8x768xf32> -> vector<8x768xf32>
    %108 = arith.addf %103, %107 : vector<8x768xf32>
    %c0_90 = arith.constant 0 : index
    %c145_91 = arith.constant 145 : index
    %109 = vector.load %arg9[%c0_90, %c145_91] : memref<8x1024xf32, #tpu.memory_space<vmem>>, vector<8x768xf32>
    %c6_92 = arith.constant 6 : index
    %c0_93 = arith.constant 0 : index
    %c0_94 = arith.constant 0 : index
    %110 = vector.load %arg2[%c6_92, %c0_93, %c0_94] : memref<9x8x8xf32, #tpu.memory_space<vmem>>, vector<1x8x8xf32>
    %111 = vector.shape_cast %110 : vector<1x8x8xf32> to vector<8x8xf32>
    %cst_95 = arith.constant dense<0.000000e+00> : vector<8x768xf32>
    %112 = tpu.matmul %111, %109, %cst_95 {dimension_numbers = #tpu.dot_dimension_numbers<[1], [0], [0], [1], [0, 0, 1, 1], [], []>} : vector<8x8xf32>, vector<8x768xf32>, vector<8x768xf32> -> vector<8x768xf32>
    %113 = arith.addf %108, %112 : vector<8x768xf32>
    %c0_96 = arith.constant 0 : index
    %c146_97 = arith.constant 146 : index
    %114 = vector.load %arg9[%c0_96, %c146_97] : memref<8x1024xf32, #tpu.memory_space<vmem>>, vector<8x768xf32>
    %c7_98 = arith.constant 7 : index
    %c0_99 = arith.constant 0 : index
    %c0_100 = arith.constant 0 : index
    %115 = vector.load %arg2[%c7_98, %c0_99, %c0_100] : memref<9x8x8xf32, #tpu.memory_space<vmem>>, vector<1x8x8xf32>
    %116 = vector.shape_cast %115 : vector<1x8x8xf32> to vector<8x8xf32>
    %cst_101 = arith.constant dense<0.000000e+00> : vector<8x768xf32>
    %117 = tpu.matmul %116, %114, %cst_101 {dimension_numbers = #tpu.dot_dimension_numbers<[1], [0], [0], [1], [0, 0, 1, 1], [], []>} : vector<8x8xf32>, vector<8x768xf32>, vector<8x768xf32> -> vector<8x768xf32>
    %118 = arith.addf %113, %117 : vector<8x768xf32>
    %c0_102 = arith.constant 0 : index
    %c147_103 = arith.constant 147 : index
    %119 = vector.load %arg9[%c0_102, %c147_103] : memref<8x1024xf32, #tpu.memory_space<vmem>>, vector<8x768xf32>
    %c8_104 = arith.constant 8 : index
    %c0_105 = arith.constant 0 : index
    %c0_106 = arith.constant 0 : index
    %120 = vector.load %arg2[%c8_104, %c0_105, %c0_106] : memref<9x8x8xf32, #tpu.memory_space<vmem>>, vector<1x8x8xf32>
    %121 = vector.shape_cast %120 : vector<1x8x8xf32> to vector<8x8xf32>
    %cst_107 = arith.constant dense<0.000000e+00> : vector<8x768xf32>
    %122 = tpu.matmul %121, %119, %cst_107 {dimension_numbers = #tpu.dot_dimension_numbers<[1], [0], [0], [1], [0, 0, 1, 1], [], []>} : vector<8x8xf32>, vector<8x768xf32>, vector<8x768xf32> -> vector<8x768xf32>
    %123 = arith.addf %118, %122 : vector<8x768xf32>
    %124 = vector.broadcast %0 : vector<1x768xf32> to vector<8x768xf32>
    %125 = arith.mulf %123, %124 : vector<8x768xf32>
    %cst_108 = arith.constant dense<0.000000e+00> : vector<8xf32>
    %126 = vector.multi_reduction <add>, %125, %cst_108 [1] : vector<8x768xf32> to vector<8xf32>
    %127 = vector.shape_cast %126 : vector<8xf32> to vector<8x1xf32>
    %128 = arith.mulf %125, %125 : vector<8x768xf32>
    %cst_109 = arith.constant dense<0.000000e+00> : vector<8xf32>
    %129 = vector.multi_reduction <add>, %128, %cst_109 [1] : vector<8x768xf32> to vector<8xf32>
    %130 = vector.shape_cast %129 : vector<8xf32> to vector<8x1xf32>
    %cst_110 = arith.constant 0.001953125 : f32
    %131 = vector.broadcast %cst_110 : f32 to vector<8x1xf32>
    %132 = arith.mulf %127, %131 : vector<8x1xf32>
    %cst_111 = arith.constant 0.001953125 : f32
    %133 = vector.broadcast %cst_111 : f32 to vector<8x1xf32>
    %134 = arith.mulf %130, %133 : vector<8x1xf32>
    %135 = arith.mulf %132, %132 : vector<8x1xf32>
    %136 = arith.subf %134, %135 : vector<8x1xf32>
    %cst_112 = arith.constant 0.000000e+00 : f32
    %137 = vector.broadcast %cst_112 : f32 to vector<8x1xf32>
    %138 = arith.maximumf %136, %137 : vector<8x1xf32>
    %c0_113 = arith.constant 0 : index
    %c0_114 = arith.constant 0 : index
    %139 = vector.load %arg5[%c0_113, %c0_114] : memref<8x1xf32, #tpu.memory_space<vmem>>, vector<8x1xf32>
    %cst_115 = arith.constant 9.99999974E-6 : f32
    %140 = vector.broadcast %cst_115 : f32 to vector<8x1xf32>
    %141 = arith.addf %138, %140 : vector<8x1xf32>
    %142 = math.rsqrt %141 : vector<8x1xf32>
    %143 = arith.mulf %139, %142 : vector<8x1xf32>
    %c0_116 = arith.constant 0 : index
    %c0_117 = arith.constant 0 : index
    %144 = vector.load %arg6[%c0_116, %c0_117] : memref<8x1xf32, #tpu.memory_space<vmem>>, vector<8x1xf32>
    %145 = arith.mulf %132, %143 : vector<8x1xf32>
    %146 = arith.subf %144, %145 : vector<8x1xf32>
    %147 = vector.broadcast %143 : vector<8x1xf32> to vector<8x768xf32>
    %148 = arith.mulf %125, %147 : vector<8x768xf32>
    %149 = vector.broadcast %146 : vector<8x1xf32> to vector<8x768xf32>
    %150 = arith.addf %148, %149 : vector<8x768xf32>
    %c0_118 = arith.constant 0 : index
    %c128_119 = arith.constant 128 : index
    %151 = vector.load %arg0[%c0_118, %c128_119] : memref<8x1024xf32, #tpu.memory_space<vmem>>, vector<8x768xf32>
    %152 = arith.addf %151, %150 : vector<8x768xf32>
    %cst_120 = arith.constant 0.000000e+00 : f32
    %153 = vector.broadcast %cst_120 : f32 to vector<8x768xf32>
    %154 = arith.maximumf %152, %153 : vector<8x768xf32>
    %c0_121 = arith.constant 0 : index
    %c0_122 = arith.constant 0 : index
    %155 = vector.load %arg8[%c0_121, %c0_122] : memref<8x768xf32, #tpu.memory_space<vmem>>, vector<8x768xf32>
    tpu.vector_store %arg8[%c0_121, %c0_122], %154 {strides = array<i32>} : memref<8x768xf32, #tpu.memory_space<vmem>>, vector<8x768xf32>,
    return
  }
}

</mosaic_0001>

<bundles_post_ra>
// kernel: tpu_custom_call.1
= control target key start
LH: loop header
LB: loop body
LE: loop exit
PB: predicated region body
PF: predicated region fallthrough
CT: control target
= control target key end

     0   :  { %s4836_s9 = smov 18   ;;  %v4837_v4 = vmov 0.0   ;;  %s5536_s0 = inlined_call_operand.vmem [shape: f32[8,1024], index: 0, kind: input, shape index: {}]   ;;  %s5537_s1 = inlined_call_operand.vmem [shape: f32[9,8,8], index: 1, kind: input, shape index: {}]   ;;  %s5538_s2 = inlined_call_operand.vmem [shape: f32[9,8,8], index: 2, kind: input, shape index: {}]   ;;  %s5539_s3 = inlined_call_operand.vmem [shape: f32[8,1], index: 3, kind: input, shape index: {}]   ;;  %s5540_s4 = inlined_call_operand.vmem [shape: f32[8,1], index: 4, kind: input, shape index: {}]   ;;  %s5541_s5 = inlined_call_operand.vmem [shape: f32[8,1], index: 5, kind: input, shape index: {}]   ;;  %s5542_s6 = inlined_call_operand.vmem [shape: f32[8,1], index: 6, kind: input, shape index: {}]   ;;  %s5543_s7 = inlined_call_operand.vmem [shape: f32[1,768], index: 7, kind: input, shape index: {}]   ;;  %s5544_s8 = inlined_call_operand.hbm [shape: f32[8,768], index: 8, kind: output, shape index: {}]  }
   0x1   :  { %v4895_v0 = vld [vmem:[%s5536_s0 + $0x8] sm:$0xff]  ;;  %v33_v1 = vld [vmem:[%s5536_s0] sm:$0xff]  ;;  %v4906_v2 = vld [vmem:[%s5536_s0 + $0x10] sm:$0xff]  ;;  %145 = vmatprep.mubr.f32.mxu0 %v4837_v4  ;;  %216 = vmatprep.mubr.f32.mxu1 %v4837_v4 }
   0x2   :  { %52 = vrot.lane.b32.xlu0 %v4895_v0, %s4836_s9  ;;  %50 = vrot.lane.b32.xlu1 %v33_v1, %s4836_s9  ;;  %v4911_v3 = vld [vmem:[%s5536_s0 + $0x18] sm:$0xff] }
   0x3   :  { %13 = vsyncpa [#allocation4], 0  ;;  %v4922_v5 = vld [vmem:[%s5536_s0 + $0x20] sm:$0xff]  ;;  %v4927_v6 = vld [vmem:[%s5536_s0 + $0x28] sm:$0xff]  ;;  %s4838_s20 = smov 19   ;;  %s4839_s21 = smov 17  }
   0x4   :  { %v4936_v7 = vld [vmem:[%s5536_s0 + $0x30] sm:$0xff]  ;;  %s4840_s22 = smov 1   ;;  %s4841_s23 = smov 127   ;;  %v1269_v8 = vld [vmem:[%s5536_s0 + $0x38] sm:$0xff]  ;;  %vm64_vm0 = vcmask 146432   ;;  %v4727_v14 = vld [vmem:[%s5537_s1 + $0x8] sm:$0xff] }
   0x5   :  { %s4842_s26 = smov 111   ;;  %s4843_s27 = smov 110   ;;  %vm77_vm1 = vcmask 64512   ;;  %vm308_vm2 = vcmask 154624   ;;  %v40_v29 = vld [vmem:[%s5537_s1] sm:$0xff]  ;;  %vm553_vm3 = vcmask 138240  }
   0x6   :  { %54 = vrot.lane.b32.xlu0 %v4906_v2, %s4836_s9  ;;  %56 = vrot.lane.b32.xlu1 %v4911_v3, %s4836_s9  ;;  %s4844_s28 = smov 109   ;;  %v4734_v42 = vld [vmem:[%s5537_s1 + $0x10] sm:$0xff]  ;;  %vm804_vm4 = vcmask 7168   ;;  %v4738_v57 = vld [vmem:[%s5537_s1 + $0x18] sm:$0xff]  ;;  %vm1293_vm5 = vcmask 1039360   ;;  %vm1544_vm6 = vcmask 908288  }
   0x7   :  { %vm1795_vm7 = vcmask 900096   ;;  %vm2046_vm8 = vcmask 891904  }
   0xa   :  { %58 = vrot.lane.b32.xlu0 %v4922_v5, %s4836_s9  ;;  %60 = vrot.lane.b32.xlu1 %v4927_v6, %s4836_s9 }
   0xe   :  { %62 = vrot.lane.b32.xlu0 %v4936_v7, %s4836_s9  ;;  %296 = vrot.lane.b32.xlu1 %v4895_v0, %s4838_s20 }
  0x12   :  { %298 = vrot.lane.b32.xlu0 %v4906_v2, %s4838_s20  ;;  %300 = vrot.lane.b32.xlu1 %v4911_v3, %s4838_s20 }
  0x16   :  { %302 = vrot.lane.b32.xlu0 %v4922_v5, %s4838_s20  ;;  %294 = vrot.lane.b32.xlu1 %v33_v1, %s4838_s20 }
  0x1a   :  { %304 = vrot.lane.b32.xlu0 %v4927_v6, %s4838_s20  ;;  %306 = vrot.lane.b32.xlu1 %v4936_v7, %s4838_s20 }
  0x1e   :  { %541 = vrot.lane.b32.xlu0 %v4895_v0, %s4839_s21  ;;  %543 = vrot.lane.b32.xlu1 %v4906_v2, %s4839_s21 }
  0x22   :  { %539 = vrot.lane.b32.xlu0 %v33_v1, %s4839_s21  ;;  %545 = vrot.lane.b32.xlu1 %v4911_v3, %s4839_s21 }
  0x26   :  { %547 = vrot.lane.b32.xlu0 %v4922_v5, %s4839_s21  ;;  %549 = vrot.lane.b32.xlu1 %v4927_v6, %s4839_s21 }
  0x2a   :  { %551 = vrot.lane.b32.xlu0 %v4936_v7, %s4839_s21  ;;  %792 = vrot.lane.b32.xlu1 %v4895_v0, %s4840_s22 }
  0x2e   :  { %794 = vrot.lane.b32.xlu0 %v4906_v2, %s4840_s22  ;;  %796 = vrot.lane.b32.xlu1 %v4911_v3, %s4840_s22 }
  0x32   :  { %798 = vrot.lane.b32.xlu0 %v4922_v5, %s4840_s22  ;;  %790 = vrot.lane.b32.xlu1 %v33_v1, %s4840_s22 }
  0x36   :  { %800 = vrot.lane.b32.xlu0 %v4927_v6, %s4840_s22  ;;  %802 = vrot.lane.b32.xlu1 %v4936_v7, %s4840_s22 }
  0x3a   :  { %1281 = vrot.lane.b32.xlu0 %v4906_v2, %s4841_s23  ;;  %1283 = vrot.lane.b32.xlu1 %v4911_v3, %s4841_s23 }
  0x3e   :  { %1285 = vrot.lane.b32.xlu0 %v4922_v5, %s4841_s23  ;;  %1287 = vrot.lane.b32.xlu1 %v4927_v6, %s4841_s23 }
  0x42   :  { %1279 = vrot.lane.b32.xlu0 %v4895_v0, %s4841_s23  ;;  %1289 = vrot.lane.b32.xlu1 %v4936_v7, %s4841_s23 }
  0x46   :  { %1291 = vrot.lane.b32.xlu0 %v1269_v8, %s4841_s23  ;;  %1532 = vrot.lane.b32.xlu1 %v4906_v2, %s4842_s26 }
  0x4a   :  { %1534 = vrot.lane.b32.xlu0 %v4911_v3, %s4842_s26  ;;  %1530 = vrot.lane.b32.xlu1 %v4895_v0, %s4842_s26 }
  0x4e   :  { %1536 = vrot.lane.b32.xlu0 %v4922_v5, %s4842_s26  ;;  %1538 = vrot.lane.b32.xlu1 %v4927_v6, %s4842_s26 }
  0x52   :  { %1540 = vrot.lane.b32.xlu0 %v4936_v7, %s4842_s26  ;;  %1542 = vrot.lane.b32.xlu1 %v1269_v8, %s4842_s26 }
  0x56   :  { %1783 = vrot.lane.b32.xlu0 %v4906_v2, %s4843_s27  ;;  %1785 = vrot.lane.b32.xlu1 %v4911_v3, %s4843_s27 }
  0x5a   :  { %1787 = vrot.lane.b32.xlu0 %v4922_v5, %s4843_s27  ;;  %1789 = vrot.lane.b32.xlu1 %v4927_v6, %s4843_s27 }
  0x5e   :  { %1781 = vrot.lane.b32.xlu0 %v4895_v0, %s4843_s27  ;;  %1791 = vrot.lane.b32.xlu1 %v4936_v7, %s4843_s27 }
  0x62   :  { %1793 = vrot.lane.b32.xlu0 %v1269_v8, %s4843_s27  ;;  %2034 = vrot.lane.b32.xlu1 %v4906_v2, %s4844_s28 }
  0x66   :  { %2036 = vrot.lane.b32.xlu0 %v4911_v3, %s4844_s28  ;;  %2032 = vrot.lane.b32.xlu1 %v4895_v0, %s4844_s28 }
  0x6a   :  { %2038 = vrot.lane.b32.xlu0 %v4922_v5, %s4844_s28  ;;  %2040 = vrot.lane.b32.xlu1 %v4927_v6, %s4844_s28 }
  0x6e   :  { %2042 = vrot.lane.b32.xlu0 %v4936_v7, %s4844_s28  ;;  %2044 = vrot.lane.b32.xlu1 %v1269_v8, %s4844_s28  ;;  %v4742_v8 = vld [vmem:[%s5537_s1 + $0x20] sm:$0xff] }
  0x74   :  { %v53_v9 = vpop.permute.xlu0 %52  ;;  %v51_v10 = vpop.permute.xlu1 %50 }
  0x75   :  { %v65_v15 = vsel %vm64_vm0, %v51_v10, %v53_v9 }
  0x78   :  { %v55_v11 = vpop.permute.xlu0 %54  ;;  %v57_v12 = vpop.permute.xlu1 %56 }
  0x79   :  { %v66_v13 = vsel %vm64_vm0, %v53_v9, %v55_v11  ;;  %v67_v19 = vsel %vm64_vm0, %v55_v11, %v57_v12 }
  0x7a   :  { %111 = vmatprep.subr.mxu0 %v66_v13 }
  0x7b   :  { %112 = vmatpush1.msra.mxu0 %v65_v15 }
  0x7c   :  { %v59_v16 = vpop.permute.xlu0 %58  ;;  %v61_v17 = vpop.permute.xlu1 %60  ;;  %4728 = vmatmul.mubr.msk.f32.vlgmr.msra.gmra.mxu0 %vm77_vm1, %v4727_v14 }
  0x7d   :  { %v68_v18 = vsel %vm64_vm0, %v57_v12, %v59_v16  ;;  %287 = vmatprep.mubr.f32.mxu0 %v4837_v4  ;;  %v69_v23 = vsel %vm64_vm0, %v59_v16, %v61_v17 }
  0x7e   :  { %182 = vmatprep.subr.mxu1 %v68_v18 }
  0x7f   :  { %183 = vmatpush1.msra.mxu1 %v67_v19 }
  0x80   :  { %v63_v20 = vpop.permute.xlu0 %62  ;;  %v297_v21 = vpop.permute.xlu1 %296  ;;  %4729 = vmatmul.mubr.msk.f32.vlgmr.msra.gmra.mxu1 %vm77_vm1, %v4727_v14 }
  0x81   :  { %v70_v22 = vsel %vm64_vm0, %v61_v17, %v63_v20  ;;  %388 = vmatprep.mubr.f32.mxu1 %v4837_v4 }
  0x82   :  { %253 = vmatprep.subr.mxu0 %v70_v22  ;;  %v4750_v22 = vld [vmem:[%s5537_s1 + $0x30] sm:$0xff] }
  0x83   :  { %254 = vmatpush1.msra.mxu0 %v69_v23 }
  0x84   :  { %v299_v24 = vpop.permute.xlu0 %298  ;;  %v301_v25 = vpop.permute.xlu1 %300  ;;  %4730 = vmatmul.mubr.msk.f32.vlgmr.msra.gmra.mxu0 %vm77_vm1, %v4727_v14 }
  0x85   :  { %v310_v26 = vsel %vm308_vm2, %v297_v21, %v299_v24  ;;  %459 = vmatprep.mubr.f32.mxu0 %v4837_v4  ;;  %v311_v32 = vsel %vm308_vm2, %v299_v24, %v301_v25 }
  0x86   :  { %354 = vmatprep.subr.mxu1 %v310_v26 }
  0x88   :  { %v303_v27 = vpop.permute.xlu0 %302  ;;  %v295_v28 = vpop.permute.xlu1 %294 }
  0x89   :  { %v309_v30 = vsel %vm308_vm2, %v295_v28, %v297_v21  ;;  %v312_v31 = vsel %vm308_vm2, %v301_v25, %v303_v27 }
  0x8a   :  { %355 = vmatpush1.msra.mxu1 %v309_v30  ;;  %425 = vmatprep.subr.mxu0 %v312_v31 }
  0x8b   :  { %426 = vmatpush1.msra.mxu0 %v311_v32  ;;  %4731 = vmatmul.mubr.msk.f32.vlgmr.msra.gmra.mxu1 %vm77_vm1, %v40_v29 }
  0x8c   :  { %v305_v33 = vpop.permute.xlu0 %304  ;;  %v307_v34 = vpop.permute.xlu1 %306  ;;  %4732 = vmatmul.mubr.msk.f32.vlgmr.msra.gmra.mxu0 %vm77_vm1, %v40_v29  ;;  %530 = vmatprep.mubr.f32.mxu1 %v4837_v4 }
  0x8d   :  { %v314_v35 = vsel %vm308_vm2, %v305_v33, %v307_v34  ;;  %v313_v36 = vsel %vm308_vm2, %v303_v27, %v305_v33  ;;  %633 = vmatprep.mubr.f32.mxu0 %v4837_v4 }
  0x8e   :  { %496 = vmatprep.subr.mxu1 %v314_v35 }
  0x8f   :  { %497 = vmatpush1.msra.mxu1 %v313_v36 }
  0x90   :  { %v542_v37 = vpop.permute.xlu0 %541  ;;  %v544_v38 = vpop.permute.xlu1 %543  ;;  %4733 = vmatmul.mubr.msk.f32.vlgmr.msra.gmra.mxu1 %vm77_vm1, %v40_v29 }
  0x91   :  { %v555_v39 = vsel %vm553_vm3, %v542_v37, %v544_v38  ;;  %704 = vmatprep.mubr.f32.mxu1 %v4837_v4 }
  0x92   :  { %599 = vmatprep.subr.mxu0 %v555_v39 }
  0x94   :  { %v540_v40 = vpop.permute.xlu0 %539  ;;  %v546_v41 = vpop.permute.xlu1 %545 }
  0x95   :  { %v554_v43 = vsel %vm553_vm3, %v540_v40, %v542_v37  ;;  %v556_v47 = vsel %vm553_vm3, %v544_v38, %v546_v41  ;;  %v4754_v38 = vld [vmem:[%s5537_s1 + $0x38] sm:$0xff] }
  0x96   :  { %600 = vmatpush1.msra.mxu0 %v554_v43 }
  0x97   :  { %4735 = vmatmul.mubr.msk.f32.vlgmr.msra.gmra.mxu0 %vm77_vm1, %v4734_v42 }
  0x98   :  { %v548_v44 = vpop.permute.xlu0 %547  ;;  %v550_v45 = vpop.permute.xlu1 %549  ;;  %775 = vmatprep.mubr.f32.mxu0 %v4837_v4 }
  0x99   :  { %v557_v46 = vsel %vm553_vm3, %v546_v41, %v548_v44  ;;  %v558_v51 = vsel %vm553_vm3, %v548_v44, %v550_v45 }
  0x9a   :  { %670 = vmatprep.subr.mxu1 %v557_v46 }
  0x9b   :  { %671 = vmatpush1.msra.mxu1 %v556_v47 }
  0x9c   :  { %v552_v48 = vpop.permute.xlu0 %551  ;;  %v793_v49 = vpop.permute.xlu1 %792  ;;  %4736 = vmatmul.mubr.msk.f32.vlgmr.msra.gmra.mxu1 %vm77_vm1, %v4734_v42 }
  0x9d   :  { %v559_v50 = vsel %vm553_vm3, %v550_v45, %v552_v48  ;;  %884 = vmatprep.mubr.f32.mxu1 %v4837_v4 }
  0x9e   :  { %741 = vmatprep.subr.mxu0 %v559_v50  ;;  %v4758_v50 = vld [vmem:[%s5537_s1 + $0x40] sm:$0xff] }
  0x9f   :  { %742 = vmatpush1.msra.mxu0 %v558_v51 }
  0xa0   :  { %v795_v52 = vpop.permute.xlu0 %794  ;;  %v797_v53 = vpop.permute.xlu1 %796  ;;  %4737 = vmatmul.mubr.msk.f32.vlgmr.msra.gmra.mxu0 %vm77_vm1, %v4734_v42 }
  0xa1   :  { %v806_v54 = vsel %vm804_vm4, %v793_v49, %v795_v52  ;;  %955 = vmatprep.mubr.f32.mxu0 %v4837_v4  ;;  %v807_v60 = vsel %vm804_vm4, %v795_v52, %v797_v53 }
  0xa2   :  { %850 = vmatprep.subr.mxu1 %v806_v54 }
  0xa4   :  { %v799_v55 = vpop.permute.xlu0 %798  ;;  %v791_v56 = vpop.permute.xlu1 %790 }
  0xa5   :  { %v805_v58 = vsel %vm804_vm4, %v791_v56, %v793_v49  ;;  %v808_v59 = vsel %vm804_vm4, %v797_v53, %v799_v55 }
  0xa6   :  { %851 = vmatpush1.msra.mxu1 %v805_v58  ;;  %921 = vmatprep.subr.mxu0 %v808_v59 }
  0xa7   :  { %922 = vmatpush1.msra.mxu0 %v807_v60  ;;  %4739 = vmatmul.mubr.msk.f32.vlgmr.msra.gmra.mxu1 %vm77_vm1, %v4738_v57 }
  0xa8   :  { %v801_v61 = vpop.permute.xlu0 %800  ;;  %v803_v62 = vpop.permute.xlu1 %802  ;;  %4740 = vmatmul.mubr.msk.f32.vlgmr.msra.gmra.mxu0 %vm77_vm1, %v4738_v57  ;;  %1026 = vmatprep.mubr.f32.mxu1 %v4837_v4 }
  0xa9   :  { %v809_v63 = vsel %vm804_vm4, %v799_v55, %v801_v61  ;;  %v810_v1 = vsel %vm804_vm4, %v801_v61, %v803_v62  ;;  %1074 = vmatprep.subr.mxu0 %v4906_v2  ;;  %1108 = vmatprep.mubr.f32.mxu0 %v4837_v4 }
  0xaa   :  { %992 = vmatprep.subr.mxu1 %v810_v1  ;;  %1075 = vmatpush1.msra.mxu0 %v4895_v0 }
  0xab   :  { %993 = vmatpush1.msra.mxu1 %v809_v63  ;;  %1216 = vmatprep.subr.mxu0 %v4936_v7 }
  0xac   :  { %v1282_v9 = vpop.permute.xlu0 %1281  ;;  %1145 = vmatprep.subr.mxu1 %v4922_v5  ;;  %v1284_v10 = vpop.permute.xlu1 %1283  ;;  %4741 = vmatmul.mubr.msk.f32.vlgmr.msra.gmra.mxu1 %vm77_vm1, %v4738_v57 }
  0xad   :  { %1146 = vmatpush1.msra.mxu1 %v4911_v3  ;;  %4743 = vmatmul.mubr.msk.f32.vlgmr.msra.gmra.mxu0 %vm77_vm1, %v4742_v8  ;;  %v1295_v0 = vsel %vm1293_vm5, %v1282_v9, %v1284_v10 }
  0xae   :  { %1339 = vmatprep.subr.mxu1 %v1295_v0  ;;  %1217 = vmatpush1.msra.mxu0 %v4927_v6  ;;  %v4746_v6 = vld [vmem:[%s5537_s1 + $0x28] sm:$0xff] }
  0xaf   :  { %1250 = vmatprep.mubr.f32.mxu0 %v4837_v4  ;;  %1179 = vmatprep.mubr.f32.mxu1 %v4837_v4 }
  0xb0   :  { %v1286_v2 = vpop.permute.xlu0 %1285  ;;  %v1288_v7 = vpop.permute.xlu1 %1287  ;;  %4744 = vmatmul.mubr.msk.f32.vlgmr.msra.gmra.mxu1 %vm77_vm1, %v4742_v8 }
  0xb1   :  { %v1296_v5 = vsel %vm1293_vm5, %v1284_v10, %v1286_v2  ;;  %4745 = vmatmul.mubr.msk.f32.vlgmr.msra.gmra.mxu0 %vm77_vm1, %v4742_v8  ;;  %v1297_v3 = vsel %vm1293_vm5, %v1286_v2, %v1288_v7  ;;  %1373 = vmatprep.mubr.f32.mxu1 %v4837_v4 }
  0xb2   :  { %1410 = vmatprep.subr.mxu0 %v1297_v3  ;;  %1444 = vmatprep.mubr.f32.mxu0 %v4837_v4 }
  0xb3   :  { %1411 = vmatpush1.msra.mxu0 %v1296_v5 }
  0xb4   :  { %v1280_v11 = vpop.permute.xlu0 %1279  ;;  %v1290_v12 = vpop.permute.xlu1 %1289 }
  0xb5   :  { %v1294_v13 = vsel %vm1293_vm5, %v1280_v11, %v1282_v9  ;;  %4748 = vmatmul.mubr.msk.f32.vlgmr.msra.gmra.mxu0 %vm77_vm1, %v4746_v6  ;;  %v1298_v17 = vsel %vm1293_vm5, %v1288_v7, %v1290_v12 }
  0xb6   :  { %1340 = vmatpush1.msra.mxu1 %v1294_v13  ;;  %1624 = vmatprep.mubr.f32.mxu0 %v4837_v4 }
  0xb7   :  { %4747 = vmatmul.mubr.msk.f32.vlgmr.msra.gmra.mxu1 %vm77_vm1, %v4746_v6 }
  0xb8   :  { %v1292_v14 = vpop.permute.xlu0 %1291  ;;  %v1533_v15 = vpop.permute.xlu1 %1532  ;;  %1515 = vmatprep.mubr.f32.mxu1 %v4837_v4 }
  0xb9   :  { %v1299_v16 = vsel %vm1293_vm5, %v1290_v12, %v1292_v14 }
  0xba   :  { %1481 = vmatprep.subr.mxu1 %v1299_v16 }
  0xbb   :  { %1482 = vmatpush1.msra.mxu1 %v1298_v17 }
  0xbc   :  { %v1535_v18 = vpop.permute.xlu0 %1534  ;;  %4749 = vmatmul.mubr.msk.f32.vlgmr.msra.gmra.mxu1 %vm77_vm1, %v4746_v6  ;;  %v1531_v19 = vpop.permute.xlu1 %1530 }
  0xbd   :  { %v1545_v20 = vsel %vm1544_vm6, %v1531_v19, %v1533_v15  ;;  %v1546_v21 = vsel %vm1544_vm6, %v1533_v15, %v1535_v18  ;;  %1695 = vmatprep.mubr.f32.mxu1 %v4837_v4 }
  0xbe   :  { %1590 = vmatprep.subr.mxu0 %v1546_v21 }
  0xbf   :  { %1591 = vmatpush1.msra.mxu0 %v1545_v20 }
  0xc0   :  { %v1537_v23 = vpop.permute.xlu0 %1536  ;;  %4751 = vmatmul.mubr.msk.f32.vlgmr.msra.gmra.mxu0 %vm77_vm1, %v4750_v22  ;;  %v1539_v24 = vpop.permute.xlu1 %1538 }
  0xc1   :  { %v1547_v25 = vsel %vm1544_vm6, %v1535_v18, %v1537_v23  ;;  %v1548_v26 = vsel %vm1544_vm6, %v1537_v23, %v1539_v24  ;;  %1766 = vmatprep.mubr.f32.mxu0 %v4837_v4 }
  0xc2   :  { %1661 = vmatprep.subr.mxu1 %v1548_v26 }
  0xc3   :  { %1662 = vmatpush1.msra.mxu1 %v1547_v25 }
  0xc4   :  { %v1541_v27 = vpop.permute.xlu0 %1540  ;;  %4752 = vmatmul.mubr.msk.f32.vlgmr.msra.gmra.mxu1 %vm77_vm1, %v4750_v22  ;;  %v1543_v28 = vpop.permute.xlu1 %1542 }
  0xc5   :  { %v1549_v29 = vsel %vm1544_vm6, %v1539_v24, %v1541_v27  ;;  %v1550_v30 = vsel %vm1544_vm6, %v1541_v27, %v1543_v28  ;;  %1875 = vmatprep.mubr.f32.mxu1 %v4837_v4 }
  0xc6   :  { %1732 = vmatprep.subr.mxu0 %v1550_v30 }
  0xc7   :  { %1733 = vmatpush1.msra.mxu0 %v1549_v29 }
  0xc8   :  { %v1784_v31 = vpop.permute.xlu0 %1783  ;;  %4753 = vmatmul.mubr.msk.f32.vlgmr.msra.gmra.mxu0 %vm77_vm1, %v4750_v22  ;;  %v1786_v32 = vpop.permute.xlu1 %1785 }
  0xc9   :  { %v1797_v33 = vsel %vm1795_vm7, %v1784_v31, %v1786_v32  ;;  %1946 = vmatprep.mubr.f32.mxu0 %v4837_v4 }
  0xca   :  { %1841 = vmatprep.subr.mxu1 %v1797_v33 }
  0xcc   :  { %v1788_v34 = vpop.permute.xlu0 %1787  ;;  %v1790_v35 = vpop.permute.xlu1 %1789 }
  0xcd   :  { %v1798_v36 = vsel %vm1795_vm7, %v1786_v32, %v1788_v34  ;;  %v1799_v37 = vsel %vm1795_vm7, %v1788_v34, %v1790_v35 }
  0xce   :  { %1912 = vmatprep.subr.mxu0 %v1799_v37 }
  0xcf   :  { %1913 = vmatpush1.msra.mxu0 %v1798_v36 }
  0xd0   :  { %v1782_v39 = vpop.permute.xlu0 %1781  ;;  %4756 = vmatmul.mubr.msk.f32.vlgmr.msra.gmra.mxu0 %vm77_vm1, %v4754_v38  ;;  %v1792_v40 = vpop.permute.xlu1 %1791 }
  0xd1   :  { %v1796_v41 = vsel %vm1795_vm7, %v1782_v39, %v1784_v31  ;;  %2126 = vmatprep.mubr.f32.mxu0 %v4837_v4  ;;  %v1800_v45 = vsel %vm1795_vm7, %v1790_v35, %v1792_v40 }
  0xd2   :  { %1842 = vmatpush1.msra.mxu1 %v1796_v41 }
  0xd3   :  { %4755 = vmatmul.mubr.msk.f32.vlgmr.msra.gmra.mxu1 %vm77_vm1, %v4754_v38 }
  0xd4   :  { %v1794_v42 = vpop.permute.xlu0 %1793  ;;  %v2035_v43 = vpop.permute.xlu1 %2034  ;;  %2017 = vmatprep.mubr.f32.mxu1 %v4837_v4 }
  0xd5   :  { %v1801_v44 = vsel %vm1795_vm7, %v1792_v40, %v1794_v42  ;;  %v2282_v42 = vlaneseq }
  0xd6   :  { %1983 = vmatprep.subr.mxu1 %v1801_v44 }
  0xd7   :  { %1984 = vmatpush1.msra.mxu1 %v1800_v45 }
  0xd8   :  { %v2037_v46 = vpop.permute.xlu0 %2036  ;;  %4757 = vmatmul.mubr.msk.f32.vlgmr.msra.gmra.mxu1 %vm77_vm1, %v4754_v38  ;;  %v2033_v47 = vpop.permute.xlu1 %2032 }
  0xd9   :  { %v2047_v48 = vsel %vm2046_vm8, %v2033_v47, %v2035_v43  ;;  %v2048_v49 = vsel %vm2046_vm8, %v2035_v43, %v2037_v46  ;;  %2197 = vmatprep.mubr.f32.mxu1 %v4837_v4 }
  0xda   :  { %2092 = vmatprep.subr.mxu0 %v2048_v49 }
  0xdb   :  { %2093 = vmatpush1.msra.mxu0 %v2047_v48 }
  0xdc   :  { %v2039_v51 = vpop.permute.xlu0 %2038  ;;  %4759 = vmatmul.mubr.msk.f32.vlgmr.msra.gmra.mxu0 %vm77_vm1, %v4758_v50  ;;  %v2041_v52 = vpop.permute.xlu1 %2040 }
  0xdd   :  { %v2049_v53 = vsel %vm2046_vm8, %v2037_v46, %v2039_v51  ;;  %v2050_v54 = vsel %vm2046_vm8, %v2039_v51, %v2041_v52  ;;  %2268 = vmatprep.mubr.f32.mxu0 %v4837_v4 }
  0xde   :  { %2163 = vmatprep.subr.mxu1 %v2050_v54 }
  0xdf   :  { %2164 = vmatpush1.msra.mxu1 %v2049_v53 }
  0xe0   :  { %v2043_v55 = vpop.permute.xlu0 %2042  ;;  %4760 = vmatmul.mubr.msk.f32.vlgmr.msra.gmra.mxu1 %vm77_vm1, %v4758_v50  ;;  %v2045_v56 = vpop.permute.xlu1 %2044 }
  0xe1   :  { %v2051_v57 = vsel %vm2046_vm8, %v2041_v52, %v2043_v55  ;;  %v2052_v58 = vsel %vm2046_vm8, %v2043_v55, %v2045_v56  ;;  %2500 = vmatprep.mubr.f32.mxu1 %v4837_v4  ;;  %v5171_v52 = vshrl.u32 %v2282_v42, 7 }
  0xe2   :  { %2234 = vmatprep.subr.mxu0 %v2052_v58 }
  0xe3   :  { %2235 = vmatpush1.msra.mxu0 %v2051_v57 }
  0xe4   :  { %4761 = vmatmul.mubr.msk.f32.vlgmr.msra.gmra.mxu0 %vm77_vm1, %v4758_v50 }
  0xe5   :  { %2571 = vmatprep.mubr.f32.mxu0 %v4837_v4 }
 0x13c   :  { %v147_v59 = vpop.f32.mrf.mxu0 }
 0x13e   :  { %v149_v61 = vpop.f32.mrf.mxu0 }
 0x140   :  { %v218_v60 = vpop.f32.mrf.mxu1 }
 0x142   :  { %v220_v62 = vpop.f32.mrf.mxu1 }
 0x144   :  { %v289_v63 = vpop.f32.mrf.mxu0 }
 0x146   :  { %v291_v8 = vpop.f32.mrf.mxu0 }
 0x14b   :  { %v390_v1 = vpop.f32.mrf.mxu1 }
 0x14c   :  { %v461_v10 = vpop.f32.mrf.mxu0  ;;  %v391_v31 = vadd.f32 %v390_v1, %v147_v59  ;;  %v2284_v1 = vsub.s32 0, %v5171_v52 }
 0x14d   :  { %v392_v9 = vpop.f32.mrf.mxu1  ;;  %v462_v33 = vadd.f32 %v461_v10, %v218_v60 }
 0x14e   :  { %v463_v2 = vpop.f32.mrf.mxu0  ;;  %v393_v34 = vadd.f32 %v392_v9, %v149_v61 }
 0x14f   :  { %v464_v36 = vadd.f32 %v463_v2, %v220_v62 }
 0x150   :  { %v532_v0 = vpop.f32.mrf.mxu1 }
 0x151   :  { %v533_v47 = vadd.f32 %v532_v0, %v289_v63  ;;  %v30_v63 = vld [vmem:[%s5543_s7] sm:$0x3f] }
 0x152   :  { %v534_v7 = vpop.f32.mrf.mxu1 }
 0x153   :  { %v535_v48 = vadd.f32 %v534_v7, %v291_v8  ;;  %v2288_v8 = vsub.s32 1, %v5171_v52 }
 0x157   :  { %v635_v5 = vpop.f32.mrf.mxu0 }
 0x158   :  { %v782_v37 = vadd.f32 %v635_v5, %v391_v31 }
 0x159   :  { %v637_v6 = vpop.f32.mrf.mxu0 }
 0x15a   :  { %v783_v40 = vadd.f32 %v637_v6, %v393_v34  ;;  %v2292_v6 = vsub.s32 2, %v5171_v52 }
 0x15c   :  { %v706_v3 = vpop.f32.mrf.mxu1  ;;  %v5184_v31 = vrot.slane %v30_v63, %v2292_v6 }
 0x15d   :  { %v784_v41 = vadd.f32 %v706_v3, %v462_v33 }
 0x15e   :  { %v708_v11 = vpop.f32.mrf.mxu1 }
 0x15f   :  { %v785_v44 = vadd.f32 %v708_v11, %v464_v36 }
 0x160   :  { %v777_v12 = vpop.f32.mrf.mxu0 }
 0x161   :  { %v786_v56 = vadd.f32 %v777_v12, %v533_v47 }
 0x162   :  { %v779_v14 = vpop.f32.mrf.mxu0 }
 0x163   :  { %v787_v57 = vadd.f32 %v779_v14, %v535_v48  ;;  %v5179_v14 = vrot.slane %v30_v63, %v2284_v1 }
 0x167   :  { %v886_v13 = vpop.f32.mrf.mxu1 }
 0x168   :  { %v957_v16 = vpop.f32.mrf.mxu0  ;;  %v1033_v45 = vadd.f32 %v886_v13, %v782_v37 }
 0x169   :  { %v888_v15 = vpop.f32.mrf.mxu1  ;;  %v1035_v49 = vadd.f32 %v957_v16, %v784_v41  ;;  %v5181_v16 = vrot.slane %v30_v63, %v2288_v8 }
 0x16a   :  { %v959_v18 = vpop.f32.mrf.mxu0  ;;  %v1034_v50 = vadd.f32 %v888_v15, %v783_v40 }
 0x16b   :  { %v1036_v54 = vadd.f32 %v959_v18, %v785_v44  ;;  %v2296_v18 = vsub.s32 3, %v5171_v52 }
 0x16c   :  { %v1028_v17 = vpop.f32.mrf.mxu1 }
 0x16d   :  { %v1110_v20 = vpop.f32.mrf.mxu0  ;;  %v1037_v2 = vadd.f32 %v1028_v17, %v786_v56  ;;  %v5195_v41 = vrot.slane %v30_v63, %v2296_v18 }
 0x16e   :  { %v1030_v19 = vpop.f32.mrf.mxu1  ;;  %v1257_v55 = vadd.f32 %v1110_v20, %v1033_v45 }
 0x16f   :  { %v1112_v22 = vpop.f32.mrf.mxu0  ;;  %v1038_v7 = vadd.f32 %v1030_v19, %v787_v57 }
 0x170   :  { %v1181_v21 = vpop.f32.mrf.mxu1  ;;  %v1258_v60 = vadd.f32 %v1112_v22, %v1034_v50 }
 0x171   :  { %v1252_v24 = vpop.f32.mrf.mxu0  ;;  %v1259_v61 = vadd.f32 %v1181_v21, %v1035_v49 }
 0x172   :  { %v1183_v23 = vpop.f32.mrf.mxu1  ;;  %v1261_v17 = vadd.f32 %v1252_v24, %v1037_v2 }
 0x173   :  { %v1254_v26 = vpop.f32.mrf.mxu0  ;;  %v1260_v9 = vadd.f32 %v1183_v23, %v1036_v54 }
 0x174   :  { %v1262_v19 = vadd.f32 %v1254_v26, %v1038_v7 }
 0x175   :  { %v1446_v28 = vpop.f32.mrf.mxu0 }
 0x176   :  { %v1524_v11 = vadd.f32 %v1446_v28, %v1259_v61 }
 0x177   :  { %v1375_v25 = vpop.f32.mrf.mxu1  ;;  %v1448_v30 = vpop.f32.mrf.mxu0 }
 0x178   :  { %v1522_v62 = vadd.f32 %v1375_v25, %v1257_v55  ;;  %v1525_v20 = vadd.f32 %v1448_v30, %v1260_v9  ;;  %v2300_v30 = vsub.s32 4, %v5171_v52 }
 0x179   :  { %v1377_v27 = vpop.f32.mrf.mxu1 }
 0x17a   :  { %v1523_v10 = vadd.f32 %v1377_v27, %v1258_v60 }
 0x17c   :  { %v5169_v29 = vpop.f32.mrf.mxu1 }
 0x17d   :  { %v1526_v36 = vadd.f32 %v5169_v29, %v1261_v17 }
 0x17e   :  { %v1519_v35 = vpop.f32.mrf.mxu1 }
 0x17f   :  { %v1527_v37 = vadd.f32 %v1519_v35, %v1262_v19  ;;  %v2347_v19 = vld [vmem:[%s5540_s4] sm:$0xff] }
 0x180   :  { %v1626_v32 = vpop.f32.mrf.mxu0 }
 0x181   :  { %v1773_v0 = vadd.f32 %v1626_v32, %v1522_v62 }
 0x182   :  { %v1628_v39 = vpop.f32.mrf.mxu0 }
 0x183   :  { %v1774_v12 = vadd.f32 %v1628_v39, %v1523_v10 }
 0x184   :  { %v1697_v38 = vpop.f32.mrf.mxu1 }
 0x185   :  { %v1775_v21 = vadd.f32 %v1697_v38, %v1524_v11  ;;  %v2304_v38 = vsub.s32 5, %v5171_v52  ;;  %v5206_v52 = vrot.slane %v30_v63, %v2300_v30 }
 0x186   :  { %v1699_v46 = vpop.f32.mrf.mxu1 }
 0x187   :  { %v1776_v28 = vadd.f32 %v1699_v46, %v1525_v20 }
 0x188   :  { %v1768_v43 = vpop.f32.mrf.mxu0 }
 0x189   :  { %v1777_v42 = vadd.f32 %v1768_v43, %v1526_v36  ;;  %v5208_v43 = vrot.slane %v30_v63, %v2304_v38 }
 0x18a   :  { %v1770_v53 = vpop.f32.mrf.mxu0 }
 0x18b   :  { %v1778_v44 = vadd.f32 %v1770_v53, %v1527_v37 }
 0x190   :  { %v1948_v58 = vpop.f32.mrf.mxu0 }
 0x191   :  { %v2026_v32 = vadd.f32 %v1948_v58, %v1775_v21 }
 0x192   :  { %v1950_v5 = vpop.f32.mrf.mxu0 }
 0x193   :  { %v1877_v51 = vpop.f32.mrf.mxu1  ;;  %v2027_v24 = vadd.f32 %v1950_v5, %v1776_v28 }
 0x194   :  { %v2024_v13 = vadd.f32 %v1877_v51, %v1773_v0 }
 0x195   :  { %v1879_v59 = vpop.f32.mrf.mxu1 }
 0x196   :  { %v2025_v22 = vadd.f32 %v1879_v59, %v1774_v12 }
 0x198   :  { %v2019_v3 = vpop.f32.mrf.mxu1 }
 0x199   :  { %v2028_v49 = vadd.f32 %v2019_v3, %v1777_v42  ;;  %v4845_v3 = vmov 0  }
 0x19a   :  { %v2021_v25 = vpop.f32.mrf.mxu1  ;;  %4808 = vset.pattern.permute.xlu0 %v4845_v3  ;;  %4809 = vset.pattern.permute.xlu1 %v4845_v3 }
 0x19b   :  { %v2029_v50 = vadd.f32 %v2021_v25, %v1778_v44 }
 0x19c   :  { %v2128_v15 = vpop.f32.mrf.mxu0 }
 0x19d   :  { %v2275_v23 = vadd.f32 %v2128_v15, %v2024_v13 }
 0x19e   :  { %v2130_v27 = vpop.f32.mrf.mxu0 }
 0x19f   :  { %v5187_v33 = vmul.f32 %v5179_v14, %v2275_v23  ;;  %v2276_v34 = vadd.f32 %v2130_v27, %v2025_v22  ;;  %v2343_v22 = vld [vmem:[%s5539_s3] sm:$0xff] }
 0x1a0   :  { %v2199_v39 = vpop.f32.mrf.mxu1 }
 0x1a1   :  { %v5193_v26 = vmul.f32 %v5181_v16, %v2276_v34  ;;  %v2277_v40 = vadd.f32 %v2199_v39, %v2026_v32  ;;  %v2325_v45 = vmul.f32 %v5187_v33, %v5187_v33 }
 0x1a2   :  { %v2201_v46 = vpop.f32.mrf.mxu1 }
 0x1a3   :  { %v2318_v29 = vadd.f32 %v5193_v26, %v5187_v33  ;;  %v2326_v35 = vmul.f32 %v5193_v26, %v5193_v26  ;;  %v5204_v47 = vmul.f32 %v5184_v31, %v2277_v40  ;;  %v2278_v48 = vadd.f32 %v2201_v46, %v2027_v24 }
 0x1a4   :  { %v2270_v51 = vpop.f32.mrf.mxu0 }
 0x1a5   :  { %v2331_v53 = vadd.f32 %v2326_v35, %v2325_v45  ;;  %v2319_v54 = vadd.f32 %v2318_v29, %v5204_v47  ;;  %v2327_v55 = vmul.f32 %v5204_v47, %v5204_v47  ;;  %v2315_v56 = vmul.f32 %v5195_v41, %v2278_v48 }
 0x1a6   :  { %v2279_v57 = vadd.f32 %v2270_v51, %v2028_v49  ;;  %v2272_v58 = vpop.f32.mrf.mxu0 }
 0x1a7   :  { %v2328_v59 = vmul.f32 %v2315_v56, %v2315_v56  ;;  %v2280_v60 = vadd.f32 %v2272_v58, %v2029_v50  ;;  %v2320_v61 = vadd.f32 %v2319_v54, %v2315_v56  ;;  %v2332_v62 = vadd.f32 %v2331_v53, %v2327_v55 }
 0x1a8   :  { %v2316_v1 = vmul.f32 %v5206_v52, %v2279_v57 }
 0x1a9   :  { %v2317_v8 = vmul.f32 %v5208_v43, %v2280_v60  ;;  %v2333_v63 = vadd.f32 %v2332_v62, %v2328_v59 }
 0x1aa   :  { %v2321_v9 = vadd.f32 %v2320_v61, %v2316_v1  ;;  %v2329_v10 = vmul.f32 %v2316_v1, %v2316_v1 }
 0x1ab   :  { %v2330_v0 = vmul.f32 %v2317_v8, %v2317_v8 }
 0x1ac   :  { %v2322_v2 = vadd.f32 %v2321_v9, %v2317_v8  ;;  %v2334_v7 = vadd.f32 %v2333_v63, %v2329_v10 }
 0x1ae   :  { %2323 = vadd.xlane.f32.xlu0 %v2322_v2  ;;  %v2335_v5 = vadd.f32 %v2334_v7, %v2330_v0  ;;  %v4762_v0 = vld [vmem:[%s5538_s2 + $0x8] sm:$0xff] }
 0x1b0   :  { %2336 = vadd.xlane.f32.xlu1 %v2335_v5 }
 0x237   :  { %v2324_v6 = vpop.xlane.xlu0 %2323 }
 0x238   :  { %v2338_v11 = vmul.f32 0.001953125, %v2324_v6 }
 0x239   :  { %v2337_v12 = vpop.xlane.xlu1 %2336 }
 0x23a   :  { %v2340_v13 = vmul.f32 %v2338_v11, %v2338_v11  ;;  %v2339_v15 = vmul.f32 0.001953125, %v2337_v12 }
 0x23c   :  { %v2341_v18 = vsub.f32 %v2339_v15, %v2340_v13 }
 0x23e   :  { %v2342_v20 = vmax.f32 %v2341_v18, 0.0 }
 0x240   :  { %v2344_v21 = vadd.f32 1e-05, %v2342_v20 }
 0x242   :  { %4810 = vrsqrt.f32 %v2344_v21 }
 0x24f   :  { %v4811_v23 = vpop.eup %4810 }
 0x250   :  { %v2346_v17 = vmul.f32 %v4811_v23, %v2343_v22 }
 0x252   :  { %2352 = vperm.xlu0 %4808, %v2346_v17   ;;  %v2348_v25 = vmul.f32 %v2346_v17, %v2338_v11 }
 0x254   :  { %v2349_v27 = vsub.f32 %v2347_v19, %v2348_v25  ;;  %v2397_v19 = vld [vmem:[%s5538_s2] sm:$0xff] }
 0x256   :  { %2363 = vperm.xlu1 %4809, %v2349_v27   ;;  %2893 = vrot.lane.b32.xlu0 %v4837_v4, %s4839_s21 }
 0x25a   :  { %2407 = vrot.lane.b32.xlu1 %v4837_v4, %s4836_s9  ;;  %3643 = vrot.lane.b32.xlu0 %v4837_v4, %s4841_s23 }
 0x25e   :  { %2649 = vrot.lane.b32.xlu1 %v4837_v4, %s4838_s20  ;;  %4143 = vrot.lane.b32.xlu0 %v4837_v4, %s4843_s27 }
 0x262   :  { %3143 = vrot.lane.b32.xlu1 %v4837_v4, %s4840_s22 }
 0x266   :  { %3893 = vrot.lane.b32.xlu1 %v4837_v4, %s4842_s26 }
 0x2cd   :  { %v2353_v28 = vpop.permute.xlu0 %2352 }
 0x2ce   :  { %v2355_v32 = vmul.f32 %v2353_v28, %v5187_v33  ;;  %v2356_v34 = vmul.f32 %v2353_v28, %v5193_v26  ;;  %v2360_v36 = vmul.f32 %v2353_v28, %v2317_v8  ;;  %v2357_v24 = vmul.f32 %v2353_v28, %v5204_v47 }
 0x2cf   :  { %v2358_v42 = vmul.f32 %v2353_v28, %v2315_v56  ;;  %v2359_v26 = vmul.f32 %v2353_v28, %v2316_v1 }
 0x2d1   :  { %v2364_v37 = vpop.permute.xlu1 %2363  ;;  %v5351_v58 = vpop.permute.xlu0 %2893 }
 0x2d2   :  { %v2366_v39 = vadd.f32 %v2364_v37, %v2355_v32  ;;  %v2367_v30 = vadd.f32 %v2364_v37, %v2356_v34  ;;  %v2371_v38 = vadd.f32 %v2364_v37, %v2360_v36  ;;  %v2368_v45 = vadd.f32 %v2364_v37, %v2357_v24 }
 0x2d3   :  { %v2369_v35 = vadd.f32 %v2364_v37, %v2358_v42  ;;  %v2370_v49 = vadd.f32 %v2364_v37, %v2359_v26 }
 0x2d4   :  { %v2372_v40 = vmax.f32 %v2366_v39, 0.0  ;;  %v2377_v44 = vmax.f32 %v2371_v38, 0.0  ;;  %v2373_v46 = vmax.f32 %v2367_v30, 0.0  ;;  %v2374_v47 = vmax.f32 %v2368_v45, 0.0 }
 0x2d5   :  { %v2375_v50 = vmax.f32 %v2369_v35, 0.0  ;;  %v2376_v53 = vmax.f32 %v2370_v49, 0.0  ;;  %v2408_v56 = vpop.permute.xlu1 %2407  ;;  %v5357_v60 = vpop.permute.xlu0 %3643 }
 0x2d6   :  { %v5240_v29 = vmul.f32 %v2372_v40, %v5179_v14  ;;  %v5243_v33 = vmul.f32 %v2377_v44, %v5208_v43  ;;  %v5250_v48 = vmul.f32 %v2373_v46, %v5181_v16  ;;  %v5257_v51 = vmul.f32 %v2374_v47, %v5184_v31  ;;  %v4769_v40 = vld [vmem:[%s5538_s2 + $0x10] sm:$0xff] }
 0x2d7   :  { %v5260_v54 = vmul.f32 %v2375_v50, %v5195_v41  ;;  %v5267_v55 = vmul.f32 %v2376_v53, %v5206_v52 }
 0x2d8   :  { %2409 = vrot.lane.b32.xlu1 %v5240_v29, %s4836_s9  ;;  %2419 = vrot.lane.b32.xlu0 %v5243_v33, %s4836_s9 }
 0x2d9   :  { %v2650_v57 = vpop.permute.xlu1 %2649  ;;  %v5363_v62 = vpop.permute.xlu0 %4143 }
 0x2dc   :  { %2411 = vrot.lane.b32.xlu1 %v5250_v48, %s4836_s9  ;;  %2653 = vrot.lane.b32.xlu0 %v5250_v48, %s4838_s20 }
 0x2dd   :  { %v5355_v59 = vpop.permute.xlu1 %3143 }
 0x2e0   :  { %2413 = vrot.lane.b32.xlu1 %v5257_v51, %s4836_s9  ;;  %2657 = vrot.lane.b32.xlu0 %v5260_v54, %s4838_s20 }
 0x2e1   :  { %v5361_v61 = vpop.permute.xlu1 %3893 }
 0x2e4   :  { %2415 = vrot.lane.b32.xlu1 %v5260_v54, %s4836_s9  ;;  %2659 = vrot.lane.b32.xlu0 %v5267_v55, %s4838_s20 }
 0x2e8   :  { %2417 = vrot.lane.b32.xlu1 %v5267_v55, %s4836_s9  ;;  %2895 = vrot.lane.b32.xlu0 %v5240_v29, %s4839_s21 }
 0x2ec   :  { %2651 = vrot.lane.b32.xlu1 %v5240_v29, %s4838_s20  ;;  %2901 = vrot.lane.b32.xlu0 %v5260_v54, %s4839_s21 }
 0x2f0   :  { %2655 = vrot.lane.b32.xlu1 %v5257_v51, %s4838_s20  ;;  %2905 = vrot.lane.b32.xlu0 %v5243_v33, %s4839_s21 }
 0x2f4   :  { %2661 = vrot.lane.b32.xlu1 %v5243_v33, %s4838_s20  ;;  %3147 = vrot.lane.b32.xlu0 %v5250_v48, %s4840_s22 }
 0x2f8   :  { %2897 = vrot.lane.b32.xlu1 %v5250_v48, %s4839_s21  ;;  %3151 = vrot.lane.b32.xlu0 %v5260_v54, %s4840_s22 }
 0x2fc   :  { %2899 = vrot.lane.b32.xlu1 %v5257_v51, %s4839_s21  ;;  %3153 = vrot.lane.b32.xlu0 %v5267_v55, %s4840_s22 }
 0x300   :  { %2903 = vrot.lane.b32.xlu1 %v5267_v55, %s4839_s21  ;;  %3633 = vrot.lane.b32.xlu0 %v5250_v48, %s4841_s23 }
 0x304   :  { %3145 = vrot.lane.b32.xlu1 %v5240_v29, %s4840_s22  ;;  %3637 = vrot.lane.b32.xlu0 %v5260_v54, %s4841_s23 }
 0x308   :  { %3149 = vrot.lane.b32.xlu1 %v5257_v51, %s4840_s22  ;;  %3631 = vrot.lane.b32.xlu0 %v5240_v29, %s4841_s23 }
 0x30c   :  { %3155 = vrot.lane.b32.xlu1 %v5243_v33, %s4840_s22  ;;  %3885 = vrot.lane.b32.xlu0 %v5257_v51, %s4842_s26  ;;  %s4846_s22 = smov [#allocation3]  }
 0x310   :  { %3635 = vrot.lane.b32.xlu1 %v5257_v51, %s4841_s23  ;;  %3887 = vrot.lane.b32.xlu0 %v5260_v54, %s4842_s26 }
 0x314   :  { %3639 = vrot.lane.b32.xlu1 %v5267_v55, %s4841_s23  ;;  %3891 = vrot.lane.b32.xlu0 %v5243_v33, %s4842_s26 }
 0x318   :  { %3641 = vrot.lane.b32.xlu1 %v5243_v33, %s4841_s23  ;;  %4133 = vrot.lane.b32.xlu0 %v5250_v48, %s4843_s27  ;;  %s4719_s23 = sshll.u32 %s4846_s22, 4  ;;  %s4720_s23 = int_to_ptr.vmem [resolvable:$true] %s4719_s23 }
 0x319   :  { %p4819_p1 = scmp.lt.s32.totalorder %s4720_s23, %s4720_s23 }
 0x31c   :  { %3883 = vrot.lane.b32.xlu1 %v5250_v48, %s4842_s26  ;;  %4137 = vrot.lane.b32.xlu0 %v5260_v54, %s4843_s27 }
 0x320   :  { %3881 = vrot.lane.b32.xlu1 %v5240_v29, %s4842_s26  ;;  %4131 = vrot.lane.b32.xlu0 %v5240_v29, %s4843_s27 }
 0x324   :  { %3889 = vrot.lane.b32.xlu1 %v5267_v55, %s4842_s26  ;;  %4385 = vrot.lane.b32.xlu0 %v5257_v51, %s4844_s28 }
 0x328   :  { %4135 = vrot.lane.b32.xlu1 %v5257_v51, %s4843_s27  ;;  %4387 = vrot.lane.b32.xlu0 %v5260_v54, %s4844_s28 }
 0x32c   :  { %4139 = vrot.lane.b32.xlu1 %v5267_v55, %s4843_s27  ;;  %4391 = vrot.lane.b32.xlu0 %v5243_v33, %s4844_s28 }
 0x330   :  { %4141 = vrot.lane.b32.xlu1 %v5243_v33, %s4843_s27 }
 0x334   :  { %4383 = vrot.lane.b32.xlu1 %v5250_v48, %s4844_s28 }
 0x338   :  { %4381 = vrot.lane.b32.xlu1 %v5240_v29, %s4844_s28 }
 0x33c   :  { %4389 = vrot.lane.b32.xlu1 %v5267_v55, %s4844_s28 }
 0x340   :  { %4393 = vrot.lane.b32.xlu1 %v4837_v4, %s4844_s28 }
 0x34a   :  { %v2410_v1 = vpop.permute.xlu1 %2409  ;;  %v2420_v8 = vpop.permute.xlu0 %2419 }
 0x34b   :  { %v2421_v2 = vsel %vm64_vm0, %v2408_v56, %v2410_v1 }
 0x34e   :  { %v2412_v63 = vpop.permute.xlu1 %2411  ;;  %v2654_v9 = vpop.permute.xlu0 %2653 }
 0x34f   :  { %v2422_v10 = vsel %vm64_vm0, %v2410_v1, %v2412_v63  ;;  %v4773_v1 = vld [vmem:[%s5538_s2 + $0x18] sm:$0xff] }
 0x350   :  { %2466 = vmatprep.subr.mxu1 %v2422_v10 }
 0x351   :  { %2467 = vmatpush1.msra.mxu1 %v2421_v2 }
 0x352   :  { %v2414_v7 = vpop.permute.xlu1 %2413  ;;  %4763 = vmatmul.mubr.msk.f32.vlgmr.msra.gmra.mxu1 %vm77_vm1, %v4762_v0  ;;  %v2658_v5 = vpop.permute.xlu0 %2657 }
 0x353   :  { %2642 = vmatprep.mubr.f32.mxu1 %v4837_v4  ;;  %v2423_v12 = vsel %vm64_vm0, %v2412_v63, %v2414_v7 }
 0x356   :  { %v2416_v3 = vpop.permute.xlu1 %2415  ;;  %v2660_v6 = vpop.permute.xlu0 %2659 }
 0x357   :  { %v2424_v11 = vsel %vm64_vm0, %v2414_v7, %v2416_v3  ;;  %v2667_v39 = vsel %vm308_vm2, %v2658_v5, %v2660_v6  ;;  %v4777_v7 = vld [vmem:[%s5538_s2 + $0x20] sm:$0xff] }
 0x358   :  { %2537 = vmatprep.subr.mxu0 %v2424_v11 }
 0x359   :  { %2538 = vmatpush1.msra.mxu0 %v2423_v12 }
 0x35a   :  { %v2418_v13 = vpop.permute.xlu1 %2417  ;;  %4764 = vmatmul.mubr.msk.f32.vlgmr.msra.gmra.mxu0 %vm77_vm1, %v4762_v0  ;;  %v2896_v15 = vpop.permute.xlu0 %2895 }
 0x35b   :  { %v2425_v18 = vsel %vm64_vm0, %v2416_v3, %v2418_v13  ;;  %v2426_v20 = vsel %vm64_vm0, %v2418_v13, %v2420_v8  ;;  %2742 = vmatprep.mubr.f32.mxu0 %v4837_v4  ;;  %v2907_v42 = vsel %vm553_vm3, %v5351_v58, %v2896_v15 }
 0x35c   :  { %2608 = vmatprep.subr.mxu1 %v2426_v20 }
 0x35d   :  { %2609 = vmatpush1.msra.mxu1 %v2425_v18 }
 0x35e   :  { %v2652_v21 = vpop.permute.xlu1 %2651  ;;  %4765 = vmatmul.mubr.msk.f32.vlgmr.msra.gmra.mxu1 %vm77_vm1, %v4762_v0  ;;  %v2902_v22 = vpop.permute.xlu0 %2901 }
 0x35f   :  { %v2663_v23 = vsel %vm308_vm2, %v2650_v57, %v2652_v21  ;;  %v2664_v17 = vsel %vm308_vm2, %v2652_v21, %v2654_v9  ;;  %2813 = vmatprep.mubr.f32.mxu1 %v4837_v4 }
 0x360   :  { %2708 = vmatprep.subr.mxu0 %v2664_v17 }
 0x361   :  { %2709 = vmatpush1.msra.mxu0 %v2663_v23 }
 0x362   :  { %v2656_v25 = vpop.permute.xlu1 %2655  ;;  %4766 = vmatmul.mubr.msk.f32.vlgmr.msra.gmra.mxu0 %vm77_vm1, %v2397_v19  ;;  %v2906_v27 = vpop.permute.xlu0 %2905 }
 0x363   :  { %v2665_v28 = vsel %vm308_vm2, %v2654_v9, %v2656_v25  ;;  %v2666_v32 = vsel %vm308_vm2, %v2656_v25, %v2658_v5  ;;  %2884 = vmatprep.mubr.f32.mxu0 %v4837_v4 }
 0x364   :  { %2779 = vmatprep.subr.mxu1 %v2666_v32 }
 0x365   :  { %2780 = vmatpush1.msra.mxu1 %v2665_v28 }
 0x366   :  { %v2662_v34 = vpop.permute.xlu1 %2661  ;;  %4767 = vmatmul.mubr.msk.f32.vlgmr.msra.gmra.mxu1 %vm77_vm1, %v2397_v19  ;;  %v3148_v36 = vpop.permute.xlu0 %3147 }
 0x367   :  { %v2668_v37 = vsel %vm308_vm2, %v2660_v6, %v2662_v34  ;;  %2986 = vmatprep.mubr.f32.mxu1 %v4837_v4 }
 0x368   :  { %2850 = vmatprep.subr.mxu0 %v2668_v37  ;;  %v4789_v37 = vld [vmem:[%s5538_s2 + $0x38] sm:$0xff] }
 0x369   :  { %2851 = vmatpush1.msra.mxu0 %v2667_v39 }
 0x36a   :  { %v2898_v30 = vpop.permute.xlu1 %2897  ;;  %4768 = vmatmul.mubr.msk.f32.vlgmr.msra.gmra.mxu0 %vm77_vm1, %v2397_v19  ;;  %v3152_v38 = vpop.permute.xlu0 %3151 }
 0x36b   :  { %v2908_v24 = vsel %vm553_vm3, %v2896_v15, %v2898_v30  ;;  %3057 = vmatprep.mubr.f32.mxu0 %v4837_v4 }
 0x36c   :  { %2952 = vmatprep.subr.mxu1 %v2908_v24 }
 0x36d   :  { %2953 = vmatpush1.msra.mxu1 %v2907_v42 }
 0x36e   :  { %v2900_v44 = vpop.permute.xlu1 %2899  ;;  %4770 = vmatmul.mubr.msk.f32.vlgmr.msra.gmra.mxu1 %vm77_vm1, %v4769_v40  ;;  %v3154_v45 = vpop.permute.xlu0 %3153 }
 0x36f   :  { %v2909_v46 = vsel %vm553_vm3, %v2898_v30, %v2900_v44  ;;  %v2910_v35 = vsel %vm553_vm3, %v2900_v44, %v2902_v22  ;;  %3128 = vmatprep.mubr.f32.mxu1 %v4837_v4  ;;  %v3161_v5 = vsel %vm804_vm4, %v3152_v38, %v3154_v45 }
 0x370   :  { %3023 = vmatprep.subr.mxu0 %v2910_v35 }
 0x371   :  { %3024 = vmatpush1.msra.mxu0 %v2909_v46 }
 0x372   :  { %v2904_v26 = vpop.permute.xlu1 %2903  ;;  %4771 = vmatmul.mubr.msk.f32.vlgmr.msra.gmra.mxu0 %vm77_vm1, %v4769_v40  ;;  %v3634_v47 = vpop.permute.xlu0 %3633 }
 0x373   :  { %v2911_v49 = vsel %vm553_vm3, %v2902_v22, %v2904_v26  ;;  %v2912_v50 = vsel %vm553_vm3, %v2904_v26, %v2906_v27  ;;  %3236 = vmatprep.mubr.f32.mxu0 %v4837_v4 }
 0x374   :  { %3094 = vmatprep.subr.mxu1 %v2912_v50 }
 0x375   :  { %3095 = vmatpush1.msra.mxu1 %v2911_v49 }
 0x376   :  { %v3146_v53 = vpop.permute.xlu1 %3145  ;;  %4772 = vmatmul.mubr.msk.f32.vlgmr.msra.gmra.mxu1 %vm77_vm1, %v4769_v40  ;;  %v3638_v56 = vpop.permute.xlu0 %3637 }
 0x377   :  { %v3157_v57 = vsel %vm804_vm4, %v5355_v59, %v3146_v53  ;;  %v3158_v58 = vsel %vm804_vm4, %v3146_v53, %v3148_v36  ;;  %3307 = vmatprep.mubr.f32.mxu1 %v4837_v4 }
 0x378   :  { %3202 = vmatprep.subr.mxu0 %v3158_v58 }
 0x379   :  { %3203 = vmatpush1.msra.mxu0 %v3157_v57 }
 0x37a   :  { %v3150_v8 = vpop.permute.xlu1 %3149  ;;  %4774 = vmatmul.mubr.msk.f32.vlgmr.msra.gmra.mxu0 %vm77_vm1, %v4773_v1  ;;  %v3632_v63 = vpop.permute.xlu0 %3631 }
 0x37b   :  { %v3159_v9 = vsel %vm804_vm4, %v3148_v36, %v3150_v8  ;;  %v3160_v10 = vsel %vm804_vm4, %v3150_v8, %v3152_v38  ;;  %3378 = vmatprep.mubr.f32.mxu0 %v4837_v4 }
 0x37c   :  { %3273 = vmatprep.subr.mxu1 %v3160_v10 }
 0x37d   :  { %3274 = vmatpush1.msra.mxu1 %v3159_v9 }
 0x37e   :  { %4775 = vmatmul.mubr.msk.f32.vlgmr.msra.gmra.mxu1 %vm77_vm1, %v4773_v1  ;;  %3426 = vmatprep.subr.mxu1 %v5250_v48  ;;  %v3156_v59 = vpop.permute.xlu1 %3155  ;;  %v3886_v0 = vpop.permute.xlu0 %3885 }
 0x37f   :  { %3427 = vmatpush1.msra.mxu1 %v5240_v29  ;;  %v3162_v2 = vsel %vm804_vm4, %v3154_v45, %v3156_v59  ;;  %3460 = vmatprep.mubr.f32.mxu1 %v4837_v4 }
 0x380   :  { %3344 = vmatprep.subr.mxu0 %v3162_v2  ;;  %3568 = vmatprep.subr.mxu1 %v5243_v33  ;;  %v3645_v33 = vsel %vm1293_vm5, %v3632_v63, %v3634_v47 }
 0x381   :  { %3345 = vmatpush1.msra.mxu0 %v3161_v5 }
 0x382   :  { %4776 = vmatmul.mubr.msk.f32.vlgmr.msra.gmra.mxu0 %vm77_vm1, %v4773_v1  ;;  %4778 = vmatmul.mubr.msk.f32.vlgmr.msra.gmra.mxu1 %vm77_vm1, %v4777_v7  ;;  %v3636_v48 = vpop.permute.xlu1 %3635  ;;  %v3888_v29 = vpop.permute.xlu0 %3887 }
 0x383   :  { %3497 = vmatprep.subr.mxu0 %v5260_v54  ;;  %3569 = vmatpush1.msra.mxu1 %v5267_v55  ;;  %v3646_v3 = vsel %vm1293_vm5, %v3634_v47, %v3636_v48  ;;  %v3647_v55 = vsel %vm1293_vm5, %v3636_v48, %v3638_v56  ;;  %v3897_v32 = vsel %vm1544_vm6, %v3886_v0, %v3888_v29  ;;  %v4793_v47 = vld [vmem:[%s5538_s2 + $0x40] sm:$0xff] }
 0x384   :  { %3498 = vmatpush1.msra.mxu0 %v5257_v51  ;;  %3531 = vmatprep.mubr.f32.mxu0 %v4837_v4  ;;  %v4781_v51 = vld [vmem:[%s5538_s2 + $0x28] sm:$0xff] }
 0x385   :  { %3690 = vmatprep.subr.mxu0 %v3646_v3  ;;  %3602 = vmatprep.mubr.f32.mxu1 %v4837_v4 }
 0x386   :  { %4779 = vmatmul.mubr.msk.f32.vlgmr.msra.gmra.mxu0 %vm77_vm1, %v4777_v7  ;;  %v3640_v6 = vpop.permute.xlu1 %3639  ;;  %4780 = vmatmul.mubr.msk.f32.vlgmr.msra.gmra.mxu1 %vm77_vm1, %v4777_v7  ;;  %v3892_v11 = vpop.permute.xlu0 %3891 }
 0x387   :  { %3691 = vmatpush1.msra.mxu0 %v3645_v33  ;;  %v3648_v54 = vsel %vm1293_vm5, %v3638_v56, %v3640_v6  ;;  %3724 = vmatprep.mubr.f32.mxu0 %v4837_v4  ;;  %v3900_v19 = vsel %vm1544_vm6, %v3892_v11, %v5361_v61 }
 0x388   :  { %3761 = vmatprep.subr.mxu1 %v3648_v54  ;;  %3795 = vmatprep.mubr.f32.mxu1 %v4837_v4 }
 0x389   :  { %3762 = vmatpush1.msra.mxu1 %v3647_v55 }
 0x38a   :  { %4782 = vmatmul.mubr.msk.f32.vlgmr.msra.gmra.mxu0 %vm77_vm1, %v4781_v51  ;;  %v3642_v12 = vpop.permute.xlu1 %3641  ;;  %4783 = vmatmul.mubr.msk.f32.vlgmr.msra.gmra.mxu1 %vm77_vm1, %v4781_v51  ;;  %v4134_v18 = vpop.permute.xlu0 %4133 }
 0x38b   :  { %v3649_v13 = vsel %vm1293_vm5, %v3640_v6, %v3642_v12  ;;  %v3650_v15 = vsel %vm1293_vm5, %v3642_v12, %v5357_v60  ;;  %3866 = vmatprep.mubr.f32.mxu0 %v4837_v4  ;;  %3974 = vmatprep.mubr.f32.mxu1 %v4837_v4  ;;  %v4785_v60 = vld [vmem:[%s5538_s2 + $0x30] sm:$0xff] }
 0x38c   :  { %3832 = vmatprep.subr.mxu0 %v3650_v15 }
 0x38d   :  { %3833 = vmatpush1.msra.mxu0 %v3649_v13 }
 0x38e   :  { %4784 = vmatmul.mubr.msk.f32.vlgmr.msra.gmra.mxu0 %vm77_vm1, %v4781_v51  ;;  %v3884_v20 = vpop.permute.xlu1 %3883  ;;  %v4138_v23 = vpop.permute.xlu0 %4137 }
 0x38f   :  { %v3896_v21 = vsel %vm1544_vm6, %v3884_v20, %v3886_v0  ;;  %4045 = vmatprep.mubr.f32.mxu0 %v4837_v4 }
 0x390   :  { %3940 = vmatprep.subr.mxu1 %v3896_v21 }
 0x392   :  { %v3882_v22 = vpop.permute.xlu1 %3881  ;;  %v4132_v34 = vpop.permute.xlu0 %4131 }
 0x393   :  { %v3895_v17 = vsel %vm1544_vm6, %v3882_v22, %v3884_v20  ;;  %v4145_v39 = vsel %vm1795_vm7, %v4132_v34, %v4134_v18 }
 0x394   :  { %3941 = vmatpush1.msra.mxu1 %v3895_v17 }
 0x395   :  { %4786 = vmatmul.mubr.msk.f32.vlgmr.msra.gmra.mxu1 %vm77_vm1, %v4785_v60  ;;  %4082 = vmatprep.subr.mxu1 %v3900_v19 }
 0x396   :  { %v3890_v25 = vpop.permute.xlu1 %3889  ;;  %4116 = vmatprep.mubr.f32.mxu1 %v4837_v4  ;;  %v4386_v45 = vpop.permute.xlu0 %4385 }
 0x397   :  { %v3899_v27 = vsel %vm1544_vm6, %v3890_v25, %v3892_v11  ;;  %v3898_v28 = vsel %vm1544_vm6, %v3888_v29, %v3890_v25 }
 0x398   :  { %4011 = vmatprep.subr.mxu0 %v3898_v28  ;;  %4083 = vmatpush1.msra.mxu1 %v3899_v27 }
 0x399   :  { %4012 = vmatpush1.msra.mxu0 %v3897_v32  ;;  %4788 = vmatmul.mubr.msk.f32.vlgmr.msra.gmra.mxu1 %vm77_vm1, %v4785_v60 }
 0x39a   :  { %4787 = vmatmul.mubr.msk.f32.vlgmr.msra.gmra.mxu0 %vm77_vm1, %v4785_v60  ;;  %v4136_v61 = vpop.permute.xlu1 %4135  ;;  %4295 = vmatprep.mubr.f32.mxu1 %v4837_v4  ;;  %v4388_v49 = vpop.permute.xlu0 %4387 }
 0x39b   :  { %v4146_v36 = vsel %vm1795_vm7, %v4134_v18, %v4136_v61  ;;  %4224 = vmatprep.mubr.f32.mxu0 %v4837_v4  ;;  %v4147_v24 = vsel %vm1795_vm7, %v4136_v61, %v4138_v23  ;;  %v4397_v56 = vsel %vm2046_vm8, %v4386_v45, %v4388_v49 }
 0x39c   :  { %4190 = vmatprep.subr.mxu0 %v4146_v36 }
 0x39d   :  { %4191 = vmatpush1.msra.mxu0 %v4145_v39 }
 0x39e   :  { %4790 = vmatmul.mubr.msk.f32.vlgmr.msra.gmra.mxu0 %vm77_vm1, %v4789_v37  ;;  %v4140_v30 = vpop.permute.xlu1 %4139  ;;  %v4392_v57 = vpop.permute.xlu0 %4391 }
 0x39f   :  { %v4148_v38 = vsel %vm1795_vm7, %v4138_v23, %v4140_v30  ;;  %4366 = vmatprep.mubr.f32.mxu0 %v4837_v4 }
 0x3a0   :  { %4261 = vmatprep.subr.mxu1 %v4148_v38 }
 0x3a1   :  { %4262 = vmatpush1.msra.mxu1 %v4147_v24 }
 0x3a2   :  { %4791 = vmatmul.mubr.msk.f32.vlgmr.msra.gmra.mxu1 %vm77_vm1, %v4789_v37  ;;  %v4142_v40 = vpop.permute.xlu1 %4141 }
 0x3a3   :  { %v4149_v42 = vsel %vm1795_vm7, %v4140_v30, %v4142_v40  ;;  %v4150_v44 = vsel %vm1795_vm7, %v4142_v40, %v5363_v62  ;;  %4474 = vmatprep.mubr.f32.mxu1 %v4837_v4 }
 0x3a4   :  { %4332 = vmatprep.subr.mxu0 %v4150_v44 }
 0x3a5   :  { %4333 = vmatpush1.msra.mxu0 %v4149_v42 }
 0x3a6   :  { %4792 = vmatmul.mubr.msk.f32.vlgmr.msra.gmra.mxu0 %vm77_vm1, %v4789_v37  ;;  %v4384_v46 = vpop.permute.xlu1 %4383 }
 0x3a7   :  { %v4396_v35 = vsel %vm2046_vm8, %v4384_v46, %v4386_v45  ;;  %4545 = vmatprep.mubr.f32.mxu0 %v4837_v4 }
 0x3a8   :  { %4440 = vmatprep.subr.mxu1 %v4396_v35 }
 0x3aa   :  { %v4382_v26 = vpop.permute.xlu1 %4381 }
 0x3ab   :  { %v4395_v62 = vsel %vm2046_vm8, %v4382_v26, %v4384_v46 }
 0x3ac   :  { %4441 = vmatpush1.msra.mxu1 %v4395_v62 }
 0x3ad   :  { %4794 = vmatmul.mubr.msk.f32.vlgmr.msra.gmra.mxu1 %vm77_vm1, %v4793_v47 }
 0x3ae   :  { %v4390_v50 = vpop.permute.xlu1 %4389  ;;  %4616 = vmatprep.mubr.f32.mxu1 %v4837_v4 }
 0x3af   :  { %v4398_v53 = vsel %vm2046_vm8, %v4388_v49, %v4390_v50  ;;  %v4399_v8 = vsel %vm2046_vm8, %v4390_v50, %v4392_v57 }
 0x3b0   :  { %4511 = vmatprep.subr.mxu0 %v4398_v53 }
 0x3b1   :  { %4512 = vmatpush1.msra.mxu0 %v4397_v56 }
 0x3b2   :  { %4795 = vmatmul.mubr.msk.f32.vlgmr.msra.gmra.mxu0 %vm77_vm1, %v4793_v47  ;;  %v4394_v58 = vpop.permute.xlu1 %4393 }
 0x3b3   :  { %v4400_v1 = vsel %vm2046_vm8, %v4392_v57, %v4394_v58 }
 0x3b4   :  { %4582 = vmatprep.subr.mxu1 %v4400_v1 }
 0x3b5   :  { %4583 = vmatpush1.msra.mxu1 %v4399_v8 }
 0x3b6   :  { %4796 = vmatmul.mubr.msk.f32.vlgmr.msra.gmra.mxu1 %vm77_vm1, %v4793_v47 }
 0x412   :  { %v2502_v63 = vpop.f32.mrf.mxu1 }
 0x414   :  { %v2504_v4 = vpop.f32.mrf.mxu1 }
 0x41a   :  { %v2573_v9 = vpop.f32.mrf.mxu0 }
 0x41c   :  { %v2575_v59 = vpop.f32.mrf.mxu0 }
 0x41e   :  { %v2644_v10 = vpop.f32.mrf.mxu1 }
 0x420   :  { %v2646_v0 = vpop.f32.mrf.mxu1 }
 0x422   :  { %v2744_v2 = vpop.f32.mrf.mxu0 }
 0x423   :  { %v2745_v37 = vadd.f32 %v2744_v2, %v2502_v63 }
 0x424   :  { %v2746_v5 = vpop.f32.mrf.mxu0 }
 0x425   :  { %v2747_v39 = vadd.f32 %v2746_v5, %v2504_v4 }
 0x426   :  { %v2815_v7 = vpop.f32.mrf.mxu1 }
 0x427   :  { %v2816_v38 = vadd.f32 %v2815_v7, %v2573_v9 }
 0x428   :  { %v2817_v48 = vpop.f32.mrf.mxu1 }
 0x429   :  { %v2818_v45 = vadd.f32 %v2817_v48, %v2575_v59 }
 0x42a   :  { %v2886_v29 = vpop.f32.mrf.mxu0 }
 0x42b   :  { %v2887_v62 = vadd.f32 %v2886_v29, %v2644_v10 }
 0x42c   :  { %v2888_v33 = vpop.f32.mrf.mxu0 }
 0x42d   :  { %v2889_v57 = vadd.f32 %v2888_v33, %v2646_v0 }
 0x42e   :  { %v2988_v3 = vpop.f32.mrf.mxu1 }
 0x42f   :  { %v3135_v40 = vadd.f32 %v2988_v3, %v2745_v37 }
 0x430   :  { %v2990_v6 = vpop.f32.mrf.mxu1 }
 0x431   :  { %v3136_v44 = vadd.f32 %v2990_v6, %v2747_v39 }
 0x432   :  { %v3059_v11 = vpop.f32.mrf.mxu0 }
 0x433   :  { %v3137_v46 = vadd.f32 %v3059_v11, %v2816_v38 }
 0x434   :  { %v3061_v51 = vpop.f32.mrf.mxu0 }
 0x435   :  { %v3138_v50 = vadd.f32 %v3061_v51, %v2818_v45 }
 0x436   :  { %v3130_v54 = vpop.f32.mrf.mxu1 }
 0x437   :  { %v3139_v8 = vadd.f32 %v3130_v54, %v2887_v62 }
 0x438   :  { %v3132_v55 = vpop.f32.mrf.mxu1 }
 0x439   :  { %v3140_v5 = vadd.f32 %v3132_v55, %v2889_v57 }
 0x43a   :  { %v3238_v12 = vpop.f32.mrf.mxu0 }
 0x43b   :  { %v3385_v26 = vadd.f32 %v3238_v12, %v3135_v40 }
 0x43c   :  { %v3240_v15 = vpop.f32.mrf.mxu0 }
 0x43d   :  { %v3386_v49 = vadd.f32 %v3240_v15, %v3136_v44 }
 0x43e   :  { %v3309_v13 = vpop.f32.mrf.mxu1 }
 0x43f   :  { %v3387_v53 = vadd.f32 %v3309_v13, %v3137_v46 }
 0x440   :  { %v3311_v18 = vpop.f32.mrf.mxu1 }
 0x441   :  { %v3388_v2 = vadd.f32 %v3311_v18, %v3138_v50 }
 0x442   :  { %v3380_v20 = vpop.f32.mrf.mxu0  ;;  %v3462_v21 = vpop.f32.mrf.mxu1 }
 0x443   :  { %v3609_v58 = vadd.f32 %v3462_v21, %v3385_v26  ;;  %v3389_v6 = vadd.f32 %v3380_v20, %v3139_v8 }
 0x444   :  { %v3382_v22 = vpop.f32.mrf.mxu0  ;;  %v3464_v60 = vpop.f32.mrf.mxu1 }
 0x445   :  { %v3610_v4 = vadd.f32 %v3464_v60, %v3386_v49  ;;  %v3390_v33 = vadd.f32 %v3382_v22, %v3140_v5 }
 0x446   :  { %v3533_v23 = vpop.f32.mrf.mxu0  ;;  %v3604_v17 = vpop.f32.mrf.mxu1 }
 0x447   :  { %v3611_v7 = vadd.f32 %v3533_v23, %v3387_v53  ;;  %v3613_v21 = vadd.f32 %v3604_v17, %v3389_v6 }
 0x448   :  { %v3535_v19 = vpop.f32.mrf.mxu0  ;;  %v3606_v25 = vpop.f32.mrf.mxu1 }
 0x449   :  { %v3612_v12 = vadd.f32 %v3535_v19, %v3388_v2  ;;  %v3614_v39 = vadd.f32 %v3606_v25, %v3390_v33 }
 0x44a   :  { %v3726_v27 = vpop.f32.mrf.mxu0  ;;  %v3797_v28 = vpop.f32.mrf.mxu1 }
 0x44b   :  { %v3873_v9 = vadd.f32 %v3726_v27, %v3609_v58  ;;  %v3875_v13 = vadd.f32 %v3797_v28, %v3611_v7 }
 0x44c   :  { %v3728_v32 = vpop.f32.mrf.mxu0  ;;  %v3799_v34 = vpop.f32.mrf.mxu1 }
 0x44d   :  { %v3874_v59 = vadd.f32 %v3728_v32, %v3610_v4  ;;  %v3876_v60 = vadd.f32 %v3799_v34, %v3612_v12 }
 0x44e   :  { %v3868_v61 = vpop.f32.mrf.mxu0 }
 0x450   :  { %v3870_v30 = vpop.f32.mrf.mxu0 }
 0x451   :  { %v3878_v40 = vadd.f32 %v3870_v30, %v3614_v39 }
 0x455   :  { %v3976_v36 = vpop.f32.mrf.mxu1 }
 0x456   :  { %v4123_v48 = vadd.f32 %v3976_v36, %v3873_v9  ;;  %v3877_v36 = vadd.f32 %v3868_v61, %v3613_v21 }
 0x457   :  { %v3978_v24 = vpop.f32.mrf.mxu1 }
 0x458   :  { %v4124_v10 = vadd.f32 %v3978_v24, %v3874_v59 }
 0x459   :  { %v4118_v35 = vpop.f32.mrf.mxu1 }
 0x45a   :  { %v4047_v42 = vpop.f32.mrf.mxu0  ;;  %v4127_v28 = vadd.f32 %v4118_v35, %v3877_v36 }
 0x45b   :  { %v4120_v56 = vpop.f32.mrf.mxu1  ;;  %v4125_v27 = vadd.f32 %v4047_v42, %v3875_v13 }
 0x45c   :  { %v4049_v47 = vpop.f32.mrf.mxu0  ;;  %v4128_v26 = vadd.f32 %v4120_v56, %v3878_v40 }
 0x45d   :  { %v4126_v20 = vadd.f32 %v4049_v47, %v3876_v60  ;;  %v4689_v60 = vld [vmem:[%s5536_s0 + $0x8] sm:$0xff] }
 0x45e   :  { %v4226_v1 = vpop.f32.mrf.mxu0 }
 0x45f   :  { %v4373_v29 = vadd.f32 %v4226_v1, %v4123_v48 }
 0x460   :  { %v4228_v3 = vpop.f32.mrf.mxu0 }
 0x461   :  { %v4374_v15 = vadd.f32 %v4228_v3, %v4124_v10  ;;  %v4660_v10 = vld [vmem:[%s5541_s5] sm:$0xff] }
 0x462   :  { %v4297_v63 = vpop.f32.mrf.mxu1 }
 0x463   :  { %v4375_v37 = vadd.f32 %v4297_v63, %v4125_v27 }
 0x464   :  { %v4299_v11 = vpop.f32.mrf.mxu1 }
 0x465   :  { %v4376_v24 = vadd.f32 %v4299_v11, %v4126_v20  ;;  %v4693_v20 = vld [vmem:[%s5536_s0 + $0x28] sm:$0xff] }
 0x466   :  { %v4368_v51 = vpop.f32.mrf.mxu0 }
 0x467   :  { %v4377_v45 = vadd.f32 %v4368_v51, %v4127_v28  ;;  %v4664_v51 = vld [vmem:[%s5542_s6] sm:$0xff] }
 0x468   :  { %v4370_v23 = vpop.f32.mrf.mxu0 }
 0x469   :  { %v4378_v35 = vadd.f32 %v4370_v23, %v4128_v26  ;;  %v4690_v23 = vld [vmem:[%s5536_s0 + $0x10] sm:$0xff] }
 0x46d   :  { %v4476_v0 = vpop.f32.mrf.mxu1 }
 0x46e   :  { %v4623_v54 = vadd.f32 %v4476_v0, %v4373_v29 }
 0x46f   :  { %v4478_v18 = vpop.f32.mrf.mxu1 }
 0x470   :  { %v4629_v55 = vmul.f32 %v4623_v54, %v5179_v14  ;;  %v4624_v32 = vadd.f32 %v4478_v18, %v4374_v15 }
 0x472   :  { %v4630_v38 = vmul.f32 %v4624_v32, %v5181_v16  ;;  %v4547_v19 = vpop.f32.mrf.mxu0  ;;  %v4642_v44 = vmul.f32 %v4629_v55, %v4629_v55  ;;  %v4691_v32 = vld [vmem:[%s5536_s0 + $0x18] sm:$0xff] }
 0x473   :  { %v4625_v22 = vadd.f32 %v4547_v19, %v4375_v37  ;;  %v4694_v37 = vld [vmem:[%s5536_s0 + $0x30] sm:$0xff] }
 0x474   :  { %v4635_v17 = vadd.f32 %v4630_v38, %v4629_v55  ;;  %v4643_v34 = vmul.f32 %v4630_v38, %v4630_v38  ;;  %v4549_v42 = vpop.f32.mrf.mxu0 }
 0x475   :  { %v4631_v46 = vmul.f32 %v4625_v22, %v5184_v31  ;;  %v4626_v14 = vadd.f32 %v4549_v42, %v4376_v24 }
 0x476   :  { %v4648_v61 = vadd.f32 %v4643_v34, %v4642_v44  ;;  %v4618_v47 = vpop.f32.mrf.mxu1 }
 0x477   :  { %v4636_v62 = vadd.f32 %v4635_v17, %v4631_v46  ;;  %v4644_v25 = vmul.f32 %v4631_v46, %v4631_v46  ;;  %v4632_v16 = vmul.f32 %v4626_v14, %v5195_v41  ;;  %v4627_v49 = vadd.f32 %v4618_v47, %v4377_v45 }
 0x478   :  { %v4620_v50 = vpop.f32.mrf.mxu1 }
 0x479   :  { %v4649_v53 = vadd.f32 %v4648_v61, %v4644_v25  ;;  %v4637_v30 = vadd.f32 %v4636_v62, %v4632_v16  ;;  %v4645_v57 = vmul.f32 %v4632_v16, %v4632_v16  ;;  %v4633_v58 = vmul.f32 %v4627_v49, %v5206_v52 }
 0x47a   :  { %v4628_v1 = vadd.f32 %v4620_v50, %v4378_v35 }
 0x47b   :  { %v4646_v8 = vmul.f32 %v4633_v58, %v4633_v58  ;;  %v4638_v63 = vadd.f32 %v4637_v30, %v4633_v58  ;;  %v4650_v31 = vadd.f32 %v4649_v53, %v4645_v57 }
 0x47c   :  { %v4634_v56 = vmul.f32 %v4628_v1, %v5208_v43 }
 0x47d   :  { %v4651_v4 = vadd.f32 %v4650_v31, %v4646_v8 }
 0x47e   :  { %v4639_v9 = vadd.f32 %v4638_v63, %v4634_v56  ;;  %v4647_v2 = vmul.f32 %v4634_v56, %v4634_v56 }
 0x480   :  { %4640 = vadd.xlane.f32.xlu0 %v4639_v9  ;;  %v4652_v7 = vadd.f32 %v4651_v4, %v4647_v2 }
 0x482   :  { %4653 = vadd.xlane.f32.xlu1 %v4652_v7 }
 0x509   :  { %v4641_v41 = vpop.xlane.xlu0 %4640 }
 0x50a   :  { %v4655_v5 = vmul.f32 0.001953125, %v4641_v41 }
 0x50b   :  { %v4654_v59 = vpop.xlane.xlu1 %4653 }
 0x50c   :  { %v4657_v48 = vmul.f32 %v4655_v5, %v4655_v5  ;;  %v4656_v3 = vmul.f32 0.001953125, %v4654_v59 }
 0x50e   :  { %v4658_v6 = vsub.f32 %v4656_v3, %v4657_v48 }
 0x510   :  { %v4659_v11 = vmax.f32 %v4658_v6, 0.0 }
 0x512   :  { %v4661_v52 = vadd.f32 1e-05, %v4659_v11 }
 0x514   :  { %4812 = vrsqrt.f32 %v4661_v52 }
 0x521   :  { %v4813_v43 = vpop.eup %4812 }
 0x522   :  { %v4663_v29 = vmul.f32 %v4813_v43, %v4660_v10 }
 0x524   :  { %4669 = vperm.xlu0 %4808, %v4663_v29   ;;  %v4665_v12 = vmul.f32 %v4663_v29, %v4655_v5 }
 0x526   :  { %v4666_v13 = vsub.f32 %v4664_v51, %v4665_v12 }
 0x528   :  { %4680 = vperm.xlu1 %4809, %v4666_v13  }
 0x59f   :  { %v4670_v0 = vpop.permute.xlu0 %4669 }
 0x5a0   :  { %v4672_v33 = vmul.f32 %v4670_v0, %v4629_v55  ;;  %v4673_v15 = vmul.f32 %v4670_v0, %v4630_v38  ;;  %v4674_v54 = vmul.f32 %v4670_v0, %v4631_v46  ;;  %v4675_v21 = vmul.f32 %v4670_v0, %v4632_v16  ;;  %v4692_v55 = vld [vmem:[%s5536_s0 + $0x20] sm:$0xff]  ;;  %s4814_s0 = scalar_lea.vmem %s4720_s23, 768 }
 0x5a1   :  { %v4676_v27 = vmul.f32 %v4670_v0, %v4633_v58  ;;  %v4677_v18 = vmul.f32 %v4670_v0, %v4634_v56  ;;  %p4815_p0 = scmp.ne.s32.totalorder %s4720_s23, %s4814_s0  ;;  %p4820_p2 = scmp.lt.s32.totalorder %s4814_s0, %s4814_s0 }
 0x5a3   :  { %v4681_v36 = vpop.permute.xlu1 %4680  ;;  %p4821_p3 = por %p4820_p2, %p4819_p1 }
 0x5a4   :  { %v4683_v39 = vadd.f32 %v4681_v36, %v4672_v33  ;;  %v4684_v38 = vadd.f32 %v4681_v36, %v4673_v15  ;;  %v4685_v19 = vadd.f32 %v4681_v36, %v4674_v54  ;;  %v4686_v28 = vadd.f32 %v4681_v36, %v4675_v21 }
 0x5a5   :  { %v4687_v24 = vadd.f32 %v4681_v36, %v4676_v27  ;;  %v4688_v22 = vadd.f32 %v4681_v36, %v4677_v18  ;;  %p4822_p4 = pnand %p4821_p3, %p4815_p0 }
 0x5a6   :  { %v4695_v40 = vadd.f32 %v4689_v60, %v4683_v39  ;;  %v4696_v44 = vadd.f32 %v4690_v23, %v4684_v38  ;;  %v4697_v17 = vadd.f32 %v4691_v32, %v4685_v19  ;;  %v4698_v34 = vadd.f32 %v4692_v55, %v4686_v28 }
 0x5a7   :  { %v4699_v42 = vadd.f32 %v4693_v20, %v4687_v24  ;;  %v4700_v45 = vadd.f32 %v4694_v37, %v4688_v22 }
 0x5a8   :  { %v4701_v46 = vmax.f32 %v4695_v40, 0.0  ;;  %v4702_v14 = vmax.f32 %v4696_v44, 0.0  ;;  %v4703_v26 = vmax.f32 %v4697_v17, 0.0  ;;  %v4704_v61 = vmax.f32 %v4698_v34, 0.0 }
 0x5a9   :  { %v4705_v47 = vmax.f32 %v4699_v42, 0.0  ;;  %v4706_v62 = vmax.f32 %v4700_v45, 0.0 }
 0x5aa   :  { %4707 = vst [vmem:[#allocation3] sm:$0xff] %v4701_v46  ;;  %4708 = vst [vmem:[#allocation3 + $0x8] sm:$0xff] %v4702_v14 }
 0x5ab   :  { %4709 = vst [vmem:[#allocation3 + $0x10] sm:$0xff] %v4703_v26  ;;  %4710 = vst [vmem:[#allocation3 + $0x18] sm:$0xff] %v4704_v61 }
 0x5ac   :  { %4711 = vst [vmem:[#allocation3 + $0x20] sm:$0xff] %v4705_v47  ;;  %4712 = vst [vmem:[#allocation3 + $0x28] sm:$0xff] %v4706_v62 }
 0x5ad   :  { %4825 = shalt.err (!%p4822_p4)
}
 0x5ae   :  { %4722 = dma.vmem_to_hbm [thread:$0]  %s4720_s23, 768, %s5544_s8, [#allocation4]  }
 0x5af   :  { %4834 = dma.done.wait [#allocation4], 768  }
 0x5b0   :  { %4835 = vsyncadd [#allocation4], 4294966528 }
 0x5b1   :  { %4726 = vsyncpa [#allocation4], 1 }

</bundles_post_ra>
